<compile_context>
chip_gen: v6e
topology: v6e:2x2x1
jax: 0.10.0
libtpu: 0.0.40
codegen_flags: <defaults>
</compile_context>

<pallas_src>
import math
import jax
import jax.numpy as jnp
from jax import lax
from jax.experimental import pallas as pl
from jax.experimental.pallas import tpu as pltpu

# ---- small synthetic config consistent with a CLIP text transformer ----
B, S, D, H, L, E = 2, 8, 32, 4, 2, 32     # batch, seq, width, heads, layers, proj dim
FF = 4 * D                                 # MLP hidden (also the packed-aux lane width)
DH = D // H                                # head dim
EPS = 1e-5

BT = 2                                     # batch rows per grid step (batch tile)
NBT = B // BT                              # number of batch tiles (grid axis 0)

# rows of the packed per-layer aux array (L, 8, FF)
_LN1G, _LN1B, _BO, _LN2G, _LN2B, _BPJ, _BFC, _BQKV = range(8)


def _layer_norm(v, g, b):
    mu = jnp.mean(v, axis=-1, keepdims=True)
    var = jnp.mean((v - mu) ** 2, axis=-1, keepdims=True)
    return (v - mu) * lax.rsqrt(var + EPS) * g + b


def transformer_kernel(eot_ref,                         # SMEM (B,) int32 (scalar prefetch)
                       x0_ref, mask_ref,
                       wqkv_ref, wo_ref, wfc_ref, wpj_ref, aux_ref,
                       lnfg_ref, lnfb_ref, proj_ref,
                       out_ref,
                       resid_ref, attn_ref, pooled_ref):
    bt = pl.program_id(0)
    l = pl.program_id(1)
    bf16 = jnp.bfloat16

    # seed the resident residual for this batch tile (wrapper already added the pos emb)
    @pl.when(l == 0)
    def _():
        resid_ref[...] = x0_ref[...]

    x = resid_ref[...]                                    # (BT*S, D) f32
    aux = aux_ref[0]                                      # (8, FF) f32 packed vectors
    ln1g, ln1b = aux[_LN1G:_LN1G + 1, :D], aux[_LN1B:_LN1B + 1, :D]
    ln2g, ln2b = aux[_LN2G:_LN2G + 1, :D], aux[_LN2B:_LN2B + 1, :D]
    b_o, b_pj = aux[_BO:_BO + 1, :D], aux[_BPJ:_BPJ + 1, :D]
    b_fc, b_qkv = aux[_BFC:_BFC + 1, :], aux[_BQKV:_BQKV + 1, :3 * D]

    # ---- pre-LN causal multi-head self-attention ----
    xn = _layer_norm(x, ln1g, ln1b)
    # fused QKV projection: one (BT*S, D) @ (D, 3D) bf16 MXU push, f32 accumulation
    qkv = jnp.dot(xn.astype(bf16), wqkv_ref[0],
                  preferred_element_type=jnp.float32) + b_qkv
    q = qkv[:, :D] * (1.0 / math.sqrt(DH))                # scale folded into q once
    k = qkv[:, D:2 * D]
    v = qkv[:, 2 * D:]

    # attention per batch row (BT is a small static count); heads stay batched
    for b in range(BT):
        rows = pl.ds(b * S, S)
        # head-major transposed layout (H, DH, S): one 2-D transpose + sublane regroup
        qT = q[b * S:(b + 1) * S, :].T.reshape(H, DH, S)
        kT = k[b * S:(b + 1) * S, :].T.reshape(H, DH, S)
        vT = v[b * S:(b + 1) * S, :].T.reshape(H, DH, S)
        # scores: contract the sublane d dim of both operands (transposed-LHS matmul);
        # no (H, S, DH) relayout of Q and no scratch needed
        s = jnp.einsum('hdq,hdk->hqk', qT.astype(bf16), kT.astype(bf16),
                       preferred_element_type=jnp.float32) + mask_ref[...]
        s = s - jnp.max(s, axis=-1, keepdims=True)
        p = jnp.exp(s)
        p = p * pl.reciprocal(jnp.sum(p, axis=-1, keepdims=True), approx=True)
        oT = jnp.einsum('hdk,hqk->hdq', vT.astype(bf16), p.astype(bf16),
                        preferred_element_type=jnp.float32)        # (H, DH, S)
        # output projection with no (D,S)->(S,D) transpose: contract the sublane D dim
        # of o^T against Wo's first dim -> (S, D)
        attn_ref[rows, :] = lax.dot_general(
            oT.reshape(D, S).astype(bf16), wo_ref[0],
            dimension_numbers=(((0,), (0,)), ((), ())),
            preferred_element_type=jnp.float32)
    x = x + attn_ref[...] + b_o

    # ---- pre-LN MLP (QuickGELU as in CLIP) ----
    xn2 = _layer_norm(x, ln2g, ln2b)
    h1 = jnp.dot(xn2.astype(bf16), wfc_ref[0],
                 preferred_element_type=jnp.float32) + b_fc
    h1 = h1 * jax.nn.sigmoid(1.702 * h1)
    x = x + jnp.dot(h1.astype(bf16), wpj_ref[0],
                    preferred_element_type=jnp.float32) + b_pj
    resid_ref[...] = x

    # ---- fused head on the last layer: EOT gather + ln_final + text_projection ----
    @pl.when(l == pl.num_programs(1) - 1)
    def _():
        for b in range(BT):
            row = eot_ref[bt * BT + b]                    # per-row EOT index (SMEM scalar)
            pooled_ref[pl.ds(b, 1), :] = resid_ref[pl.ds(b * S + row, 1), :]
        xf = _layer_norm(pooled_ref[...], lnfg_ref[...], lnfb_ref[...])
        out_ref[...] = jnp.dot(xf.astype(bf16), proj_ref[...],
                               preferred_element_type=jnp.float32)  # (BT, E)


def text_encoder(prompts, tokenized_prompts, params):
    # hoisted out of the layer loop: pos-emb add (flattened to 2-D), causal mask,
    # per-row EOT index (scalar-prefetched)
    x0 = (prompts + params['pos'][None, :, :]).reshape(B * S, D).astype(jnp.float32)
    rows = jnp.arange(S)[:, None]
    cols = jnp.arange(S)[None, :]
    causal = jnp.where(cols > rows, -1e9, 0.0).astype(jnp.float32)          # (S, S)
    eot = jnp.argmax(tokenized_prompts, axis=-1).astype(jnp.int32)          # (B,)

    def per_layer(shape):
        n = len(shape)
        return pl.BlockSpec((1,) + shape, lambda bt, l, e, n=n: (l,) + (0,) * n)

    in_specs = [
        pl.BlockSpec((BT * S, D), lambda bt, l, e: (bt, 0)),   # prompts + pos (per tile)
        pl.BlockSpec((S, S),      lambda bt, l, e: (0, 0)),    # causal mask (hoisted)
        per_layer((D, 3 * D)),    # fused W_qkv  [Wq | Wk | Wv]  (bf16)
        per_layer((D, D)),        # W_o (bf16, untransposed)
        per_layer((D, FF)),       # W_fc (bf16)
        per_layer((FF, D)),       # W_proj (bf16)
        per_layer((8, FF)),       # packed per-layer vectors (f32)
        pl.BlockSpec((1, D), lambda bt, l, e: (0, 0)),         # ln_final gamma
        pl.BlockSpec((1, D), lambda bt, l, e: (0, 0)),         # ln_final beta
        pl.BlockSpec((D, E), lambda bt, l, e: (0, 0)),         # text_projection (bf16)
    ]

    out = pl.pallas_call(
        transformer_kernel,
        out_shape=jax.ShapeDtypeStruct((B, E), jnp.float32),
        grid_spec=pltpu.PrefetchScalarGridSpec(
            num_scalar_prefetch=1,
            grid=(NBT, L),                 # batch tiles (parallel), layers (sequential)
            in_specs=in_specs,
            out_specs=pl.BlockSpec((BT, E), lambda bt, l, e: (bt, 0)),
            scratch_shapes=[pltpu.VMEM((BT * S, D), jnp.float32),   # resident residual
                            pltpu.VMEM((BT * S, D), jnp.float32),   # attention output
                            pltpu.VMEM((BT, D), jnp.float32)]),     # pooled EOT rows
        compiler_params=pltpu.CompilerParams(
            dimension_semantics=("parallel", "arbitrary"),
            vmem_limit_bytes=48 * 1024 * 1024),
    )(eot, x0, causal,
      params['w_qkv'], params['w_o'], params['w_fc'], params['w_pj'], params['aux'],
      params['lnf_g'], params['lnf_b'], params['text_proj'])
    return out


# ---- pure-JAX reference (same math / same bf16 cast points, standard layouts) ----
def text_encoder_ref(prompts, tokenized_prompts, params):
    bf = jnp.bfloat16
    x = (prompts + params['pos'][None, :, :]).astype(jnp.float32)
    rows = jnp.arange(S)[:, None]
    cols = jnp.arange(S)[None, :]
    mask = jnp.where(cols > rows, -1e9, 0.0).astype(jnp.float32)
    scale = 1.0 / math.sqrt(DH)
    for l in range(L):
        xn = _layer_norm(x, params['ln1_g'][l], params['ln1_b'][l])
        qkv = jnp.dot(xn.astype(bf), params['w_qkv'][l],
                      preferred_element_type=jnp.float32) + params['b_qkv'][l]
        q = qkv[..., :D] * scale
        k = qkv[..., D:2 * D]
        v = qkv[..., 2 * D:]
        qh = q.reshape(B, S, H, DH).transpose(0, 2, 1, 3)
        kh = k.reshape(B, S, H, DH).transpose(0, 2, 1, 3)
        vh = v.reshape(B, S, H, DH).transpose(0, 2, 1, 3)
        s = jnp.einsum('bhqd,bhkd->bhqk', qh.astype(bf), kh.astype(bf),
                       preferred_element_type=jnp.float32) + mask
        s = s - jnp.max(s, axis=-1, keepdims=True)
        p = jnp.exp(s)
        p = p / jnp.sum(p, axis=-1, keepdims=True)
        o = jnp.einsum('bhqk,bhkd->bhqd', p.astype(bf), vh.astype(bf),
                       preferred_element_type=jnp.float32)
        o = o.transpose(0, 2, 1, 3).reshape(B, S, D)
        x = x + jnp.dot(o.astype(bf), params['w_o'][l],
                        preferred_element_type=jnp.float32) + params['b_o'][l]
        xn2 = _layer_norm(x, params['ln2_g'][l], params['ln2_b'][l])
        h1 = jnp.dot(xn2.astype(bf), params['w_fc'][l],
                     preferred_element_type=jnp.float32) + params['b_fc'][l]
        h1 = h1 * jax.nn.sigmoid(1.702 * h1)
        x = x + jnp.dot(h1.astype(bf), params['w_pj'][l],
                        preferred_element_type=jnp.float32) + params['b_pj'][l]
    xf = _layer_norm(x, params['lnf_g'], params['lnf_b'])
    eot = jnp.argmax(tokenized_prompts, axis=-1)
    pooled = xf[jnp.arange(B), eot]
    return jnp.dot(pooled.astype(bf), params['text_proj'],
                   preferred_element_type=jnp.float32)


def init_params(key):
    ks = jax.random.split(key, 16)
    f32, bf16 = jnp.float32, jnp.bfloat16
    p = {}
    p['pos'] = 0.01 * jax.random.normal(ks[0], (S, D), f32)
    p['ln1_g'] = 1.0 + 0.05 * jax.random.normal(ks[1], (L, 1, D), f32)
    p['ln1_b'] = 0.01 * jax.random.normal(ks[2], (L, 1, D), f32)
    p['w_qkv'] = (0.02 * jax.random.normal(ks[3], (L, D, 3 * D), f32)).astype(bf16)
    p['b_qkv'] = 0.01 * jax.random.normal(ks[4], (L, 1, 3 * D), f32)
    p['w_o'] = (0.02 * jax.random.normal(ks[5], (L, D, D), f32)).astype(bf16)
    p['b_o'] = 0.01 * jax.random.normal(ks[6], (L, 1, D), f32)
    p['ln2_g'] = 1.0 + 0.05 * jax.random.normal(ks[7], (L, 1, D), f32)
    p['ln2_b'] = 0.01 * jax.random.normal(ks[8], (L, 1, D), f32)
    p['w_fc'] = (0.02 * jax.random.normal(ks[9], (L, D, FF), f32)).astype(bf16)
    p['b_fc'] = 0.01 * jax.random.normal(ks[10], (L, 1, FF), f32)
    p['w_pj'] = (0.02 * jax.random.normal(ks[11], (L, FF, D), f32)).astype(bf16)
    p['b_pj'] = 0.01 * jax.random.normal(ks[12], (L, 1, D), f32)
    p['lnf_g'] = 1.0 + 0.05 * jax.random.normal(ks[13], (1, D), f32)
    p['lnf_b'] = 0.01 * jax.random.normal(ks[14], (1, D), f32)
    p['text_proj'] = (0.02 * jax.random.normal(ks[15], (D, E), f32)).astype(bf16)

    # packed per-layer small params, order must match _LN1G.._BQKV in the kernel
    def pad_ff(a):
        return jnp.pad(a, ((0, 0), (0, 0), (0, FF - a.shape[-1])))
    p['aux'] = jnp.concatenate(
        [pad_ff(p['ln1_g']), pad_ff(p['ln1_b']), pad_ff(p['b_o']),
         pad_ff(p['ln2_g']), pad_ff(p['ln2_b']), pad_ff(p['b_pj']),
         p['b_fc'], pad_ff(p['b_qkv'])], axis=1)          # (L, 8, FF) f32
    return p


if __name__ == "__main__":
    key = jax.random.PRNGKey(0)
    k_prompt, k_tok, k_par = jax.random.split(key, 3)

    prompts = jax.random.normal(k_prompt, (B, S, D), jnp.float32)
    tokenized_prompts = jax.random.randint(k_tok, (B, S), 1, 100, jnp.int32)
    # place an "EOT"-like max token at a fixed position per sequence
    tokenized_prompts = tokenized_prompts.at[0, 5].set(49407)
    tokenized_prompts = tokenized_prompts.at[1, 7].set(49407)

    params = init_params(k_par)

    out = jax.block_until_ready(text_encoder(prompts, tokenized_prompts, params))
    assert out.shape == (B, E)

    ref = jax.block_until_ready(text_encoder_ref(prompts, tokenized_prompts, params))
    err = float(jnp.max(jnp.abs(out - ref)))
    assert jnp.allclose(out, ref, rtol=1e-2, atol=1e-2), err

    print("KERNEL_OK")
</pallas_src>

<mosaic_0001>
module attributes {stable_mosaic.version = 11 : i64} {
  func.func @transformer_kernel(%arg0: i32, %arg1: i32, %arg2: memref<2xi32, #tpu.memory_space<smem>>, %arg3: memref<16x32xf32, #tpu.memory_space<vmem>>, %arg4: memref<8x8xf32, #tpu.memory_space<vmem>>, %arg5: memref<1x32x96xbf16, #tpu.memory_space<vmem>>, %arg6: memref<1x32x32xbf16, #tpu.memory_space<vmem>>, %arg7: memref<1x32x128xbf16, #tpu.memory_space<vmem>>, %arg8: memref<1x128x32xbf16, #tpu.memory_space<vmem>>, %arg9: memref<1x8x128xf32, #tpu.memory_space<vmem>>, %arg10: memref<1x32xf32, #tpu.memory_space<vmem>>, %arg11: memref<1x32xf32, #tpu.memory_space<vmem>>, %arg12: memref<32x32xbf16, #tpu.memory_space<vmem>>, %arg13: memref<2x32xf32, #tpu.memory_space<vmem>>, %arg14: memref<16x32xf32, #tpu.memory_space<vmem>>, %arg15: memref<16x32xf32, #tpu.memory_space<vmem>>, %arg16: memref<2x32xf32, #tpu.memory_space<vmem>>) attributes {dimension_semantics = [#tpu.dimension_semantics<parallel>, #tpu.dimension_semantics<arbitrary>], iteration_bounds = array<i64: 1, 2>, scalar_prefetch = 1 : i64, scratch_operands = 3 : i64, tpu.core_type = #tpu.core_type<tc>, window_params = [{transform_indices = @transform_0, window_bounds = array<i64: 16, 32>}, {pipeline_mode = #tpu.pipeline_mode<synchronous>, transform_indices = @transform_1, window_bounds = array<i64: 8, 8>}, {transform_indices = @transform_2, window_bounds = array<i64: 1, 32, 96>}, {transform_indices = @transform_3, window_bounds = array<i64: 1, 32, 32>}, {transform_indices = @transform_4, window_bounds = array<i64: 1, 32, 128>}, {transform_indices = @transform_5, window_bounds = array<i64: 1, 128, 32>}, {transform_indices = @transform_6, window_bounds = array<i64: 1, 8, 128>}, {pipeline_mode = #tpu.pipeline_mode<synchronous>, transform_indices = @transform_7, window_bounds = array<i64: 1, 32>}, {pipeline_mode = #tpu.pipeline_mode<synchronous>, transform_indices = @transform_8, window_bounds = array<i64: 1, 32>}, {pipeline_mode = #tpu.pipeline_mode<synchronous>, transform_indices = @transform_9, window_bounds = array<i64: 32, 32>}, {transform_indices = @transform_10, window_bounds = array<i64: 2, 32>}]} {
    %c0_i32 = arith.constant 0 : i32
    %0 = arith.cmpi eq, %arg1, %c0_i32 : i32
    %1 = arith.extui %0 : i1 to i32
    %c0_i32_0 = arith.constant 0 : i32
    %2 = arith.cmpi ne, %1, %c0_i32_0 : i32
    scf.if %2 {
      %c0_57 = arith.constant 0 : index
      %c0_58 = arith.constant 0 : index
      %168 = vector.load %arg3[%c0_57, %c0_58] : memref<16x32xf32, #tpu.memory_space<vmem>>, vector<16x32xf32>
      %c0_59 = arith.constant 0 : index
      %c0_60 = arith.constant 0 : index
      %169 = vector.load %arg14[%c0_59, %c0_60] : memref<16x32xf32, #tpu.memory_space<vmem>>, vector<16x32xf32>
      tpu.vector_store %arg14[%c0_59, %c0_60], %168 {strides = array<i32>} : memref<16x32xf32, #tpu.memory_space<vmem>>, vector<16x32xf32>,
    } else {
    }
    %c0 = arith.constant 0 : index
    %c0_1 = arith.constant 0 : index
    %3 = vector.load %arg14[%c0, %c0_1] : memref<16x32xf32, #tpu.memory_space<vmem>>, vector<16x32xf32>
    %c0_2 = arith.constant 0 : index
    %c0_3 = arith.constant 0 : index
    %c0_4 = arith.constant 0 : index
    %4 = vector.load %arg9[%c0_2, %c0_3, %c0_4] : memref<1x8x128xf32, #tpu.memory_space<vmem>>, vector<1x8x128xf32>
    %5 = vector.shape_cast %4 : vector<1x8x128xf32> to vector<8x128xf32>
    %6 = vector.extract_strided_slice %5 {offsets = [0, 0], sizes = [1, 32], strides = [1, 1]} : vector<8x128xf32> to vector<1x32xf32>
    %7 = vector.extract_strided_slice %5 {offsets = [1, 0], sizes = [1, 32], strides = [1, 1]} : vector<8x128xf32> to vector<1x32xf32>
    %8 = vector.extract_strided_slice %5 {offsets = [3, 0], sizes = [1, 32], strides = [1, 1]} : vector<8x128xf32> to vector<1x32xf32>
    %9 = vector.extract_strided_slice %5 {offsets = [4, 0], sizes = [1, 32], strides = [1, 1]} : vector<8x128xf32> to vector<1x32xf32>
    %10 = vector.extract_strided_slice %5 {offsets = [2, 0], sizes = [1, 32], strides = [1, 1]} : vector<8x128xf32> to vector<1x32xf32>
    %11 = vector.extract_strided_slice %5 {offsets = [5, 0], sizes = [1, 32], strides = [1, 1]} : vector<8x128xf32> to vector<1x32xf32>
    %12 = vector.extract_strided_slice %5 {offsets = [6, 0], sizes = [1, 128], strides = [1, 1]} : vector<8x128xf32> to vector<1x128xf32>
    %13 = vector.extract_strided_slice %5 {offsets = [7, 0], sizes = [1, 96], strides = [1, 1]} : vector<8x128xf32> to vector<1x96xf32>
    %cst = arith.constant dense<0.000000e+00> : vector<16xf32>
    %14 = vector.multi_reduction <add>, %3, %cst [1] : vector<16x32xf32> to vector<16xf32>
    %15 = vector.shape_cast %14 : vector<16xf32> to vector<16x1xf32>
    %cst_5 = arith.constant 3.200000e+01 : f32
    %16 = vector.broadcast %cst_5 : f32 to vector<16x1xf32>
    %17 = arith.divf %15, %16 : vector<16x1xf32>
    %18 = vector.broadcast %17 : vector<16x1xf32> to vector<16x32xf32>
    %19 = arith.subf %3, %18 : vector<16x32xf32>
    %20 = arith.mulf %19, %19 : vector<16x32xf32>
    %cst_6 = arith.constant dense<0.000000e+00> : vector<16xf32>
    %21 = vector.multi_reduction <add>, %20, %cst_6 [1] : vector<16x32xf32> to vector<16xf32>
    %22 = vector.shape_cast %21 : vector<16xf32> to vector<16x1xf32>
    %cst_7 = arith.constant 3.200000e+01 : f32
    %23 = vector.broadcast %cst_7 : f32 to vector<16x1xf32>
    %24 = arith.divf %22, %23 : vector<16x1xf32>
    %25 = vector.broadcast %17 : vector<16x1xf32> to vector<16x32xf32>
    %26 = arith.subf %3, %25 : vector<16x32xf32>
    %cst_8 = arith.constant 9.99999974E-6 : f32
    %27 = vector.broadcast %cst_8 : f32 to vector<16x1xf32>
    %28 = arith.addf %24, %27 : vector<16x1xf32>
    %29 = math.rsqrt %28 : vector<16x1xf32>
    %30 = vector.broadcast %29 : vector<16x1xf32> to vector<16x32xf32>
    %31 = arith.mulf %26, %30 : vector<16x32xf32>
    %32 = vector.broadcast %6 : vector<1x32xf32> to vector<16x32xf32>
    %33 = arith.mulf %31, %32 : vector<16x32xf32>
    %34 = vector.broadcast %7 : vector<1x32xf32> to vector<16x32xf32>
    %35 = arith.addf %33, %34 : vector<16x32xf32>
    %36 = arith.truncf %35 : vector<16x32xf32> to vector<16x32xbf16>
    %c0_9 = arith.constant 0 : index
    %c0_10 = arith.constant 0 : index
    %c0_11 = arith.constant 0 : index
    %37 = vector.load %arg5[%c0_9, %c0_10, %c0_11] : memref<1x32x96xbf16, #tpu.memory_space<vmem>>, vector<1x32x96xbf16>
    %38 = vector.shape_cast %37 : vector<1x32x96xbf16> to vector<32x96xbf16>
    %cst_12 = arith.constant dense<0.000000e+00> : vector<16x96xf32>
    %39 = tpu.matmul %36, %38, %cst_12 {dimension_numbers = #tpu.dot_dimension_numbers<[1], [0], [0], [1], [0, 0, 1, 1], [], []>} : vector<16x32xbf16>, vector<32x96xbf16>, vector<16x96xf32> -> vector<16x96xf32>
    %40 = vector.broadcast %13 : vector<1x96xf32> to vector<16x96xf32>
    %41 = arith.addf %39, %40 : vector<16x96xf32>
    %42 = vector.extract_strided_slice %41 {offsets = [0, 0], sizes = [16, 32], strides = [1, 1]} : vector<16x96xf32> to vector<16x32xf32>
    %cst_13 = arith.constant 0.353553385 : f32
    %43 = vector.broadcast %cst_13 : f32 to vector<16x32xf32>
    %44 = arith.mulf %42, %43 : vector<16x32xf32>
    %45 = vector.extract_strided_slice %41 {offsets = [0, 32], sizes = [16, 32], strides = [1, 1]} : vector<16x96xf32> to vector<16x32xf32>
    %46 = vector.extract_strided_slice %41 {offsets = [0, 64], sizes = [16, 32], strides = [1, 1]} : vector<16x96xf32> to vector<16x32xf32>
    %47 = vector.extract_strided_slice %44 {offsets = [0, 0], sizes = [8, 32], strides = [1, 1]} : vector<16x32xf32> to vector<8x32xf32>
    %48 = tpu.transpose %47, [1, 0] : vector<8x32xf32> -> vector<32x8xf32>
    %49 = vector.shape_cast %48 : vector<32x8xf32> to vector<4x8x8xf32>
    %50 = vector.extract_strided_slice %45 {offsets = [0, 0], sizes = [8, 32], strides = [1, 1]} : vector<16x32xf32> to vector<8x32xf32>
    %51 = tpu.transpose %50, [1, 0] : vector<8x32xf32> -> vector<32x8xf32>
    %52 = vector.shape_cast %51 : vector<32x8xf32> to vector<4x8x8xf32>
    %53 = vector.extract_strided_slice %46 {offsets = [0, 0], sizes = [8, 32], strides = [1, 1]} : vector<16x32xf32> to vector<8x32xf32>
    %54 = tpu.transpose %53, [1, 0] : vector<8x32xf32> -> vector<32x8xf32>
    %55 = vector.shape_cast %54 : vector<32x8xf32> to vector<4x8x8xf32>
    %56 = arith.truncf %49 : vector<4x8x8xf32> to vector<4x8x8xbf16>
    %57 = arith.truncf %52 : vector<4x8x8xf32> to vector<4x8x8xbf16>
    "tpu.trace_start"() <{level = 10 : i32, message = "hdq,hdk->hqk"}> : () -> ()
    %cst_14 = arith.constant dense<0.000000e+00> : vector<4x8x8xf32>
    %58 = tpu.matmul %56, %57, %cst_14 {dimension_numbers = #tpu.dot_dimension_numbers<[1], [1], [2], [2], [0, 0, 0, 2, 1, 2], [0], [0]>} : vector<4x8x8xbf16>, vector<4x8x8xbf16>, vector<4x8x8xf32> -> vector<4x8x8xf32>
    "tpu.trace_stop"() : () -> ()
    %c0_15 = arith.constant 0 : index
    %c0_16 = arith.constant 0 : index
    %59 = vector.load %arg4[%c0_15, %c0_16] : memref<8x8xf32, #tpu.memory_space<vmem>>, vector<8x8xf32>
    %60 = vector.shape_cast %59 : vector<8x8xf32> to vector<1x8x8xf32>
    %61 = vector.broadcast %60 : vector<1x8x8xf32> to vector<4x8x8xf32>
    %62 = arith.addf %58, %61 : vector<4x8x8xf32>
    %cst_17 = arith.constant dense<0xFF800000> : vector<4x8xf32>
    %63 = vector.multi_reduction <maximumf>, %62, %cst_17 [2] : vector<4x8x8xf32> to vector<4x8xf32>
    %64 = vector.shape_cast %63 : vector<4x8xf32> to vector<4x8x1xf32>
    %65 = vector.broadcast %64 : vector<4x8x1xf32> to vector<4x8x8xf32>
    %66 = arith.subf %62, %65 : vector<4x8x8xf32>
    %67 = math.exp %66 : vector<4x8x8xf32>
    %cst_18 = arith.constant dense<0.000000e+00> : vector<4x8xf32>
    %68 = vector.multi_reduction <add>, %67, %cst_18 [2] : vector<4x8x8xf32> to vector<4x8xf32>
    %69 = vector.shape_cast %68 : vector<4x8xf32> to vector<4x8x1xf32>
    %70 = tpu.reciprocal %69 {approx = true} : vector<4x8x1xf32> -> vector<4x8x1xf32>
    %71 = vector.broadcast %70 : vector<4x8x1xf32> to vector<4x8x8xf32>
    %72 = arith.mulf %67, %71 : vector<4x8x8xf32>
    %73 = arith.truncf %55 : vector<4x8x8xf32> to vector<4x8x8xbf16>
    %74 = arith.truncf %72 : vector<4x8x8xf32> to vector<4x8x8xbf16>
    "tpu.trace_start"() <{level = 10 : i32, message = "hdk,hqk->hdq"}> : () -> ()
    %cst_19 = arith.constant dense<0.000000e+00> : vector<4x8x8xf32>
    %75 = tpu.matmul %73, %74, %cst_19 {dimension_numbers = #tpu.dot_dimension_numbers<[2], [2], [1], [1], [0, 0, 0, 1, 1, 1], [0], [0]>} : vector<4x8x8xbf16>, vector<4x8x8xbf16>, vector<4x8x8xf32> -> vector<4x8x8xf32>
    "tpu.trace_stop"() : () -> ()
    %76 = vector.shape_cast %75 : vector<4x8x8xf32> to vector<32x8xf32>
    %77 = arith.truncf %76 : vector<32x8xf32> to vector<32x8xbf16>
    %c0_20 = arith.constant 0 : index
    %c0_21 = arith.constant 0 : index
    %c0_22 = arith.constant 0 : index
    %78 = vector.load %arg6[%c0_20, %c0_21, %c0_22] : memref<1x32x32xbf16, #tpu.memory_space<vmem>>, vector<1x32x32xbf16>
    %79 = vector.shape_cast %78 : vector<1x32x32xbf16> to vector<32x32xbf16>
    %cst_23 = arith.constant dense<0.000000e+00> : vector<8x32xf32>
    %80 = tpu.matmul %77, %79, %cst_23 {dimension_numbers = #tpu.dot_dimension_numbers<[0], [0], [1], [1], [0, 1, 1, 1], [], []>} : vector<32x8xbf16>, vector<32x32xbf16>, vector<8x32xf32> -> vector<8x32xf32>
    %c0_24 = arith.constant 0 : index
    %c0_25 = arith.constant 0 : index
    %81 = vector.load %arg15[%c0_24, %c0_25] : memref<16x32xf32, #tpu.memory_space<vmem>>, vector<8x32xf32>
    tpu.vector_store %arg15[%c0_24, %c0_25], %80 {strides = array<i32>} : memref<16x32xf32, #tpu.memory_space<vmem>>, vector<8x32xf32>,
    %82 = vector.extract_strided_slice %44 {offsets = [8, 0], sizes = [8, 32], strides = [1, 1]} : vector<16x32xf32> to vector<8x32xf32>
    %83 = tpu.transpose %82, [1, 0] : vector<8x32xf32> -> vector<32x8xf32>
    %84 = vector.shape_cast %83 : vector<32x8xf32> to vector<4x8x8xf32>
    %85 = vector.extract_strided_slice %45 {offsets = [8, 0], sizes = [8, 32], strides = [1, 1]} : vector<16x32xf32> to vector<8x32xf32>
    %86 = tpu.transpose %85, [1, 0] : vector<8x32xf32> -> vector<32x8xf32>
    %87 = vector.shape_cast %86 : vector<32x8xf32> to vector<4x8x8xf32>
    %88 = vector.extract_strided_slice %46 {offsets = [8, 0], sizes = [8, 32], strides = [1, 1]} : vector<16x32xf32> to vector<8x32xf32>
    %89 = tpu.transpose %88, [1, 0] : vector<8x32xf32> -> vector<32x8xf32>
    %90 = vector.shape_cast %89 : vector<32x8xf32> to vector<4x8x8xf32>
    %91 = arith.truncf %84 : vector<4x8x8xf32> to vector<4x8x8xbf16>
    %92 = arith.truncf %87 : vector<4x8x8xf32> to vector<4x8x8xbf16>
    "tpu.trace_start"() <{level = 10 : i32, message = "hdq,hdk->hqk"}> : () -> ()
    %cst_26 = arith.constant dense<0.000000e+00> : vector<4x8x8xf32>
    %93 = tpu.matmul %91, %92, %cst_26 {dimension_numbers = #tpu.dot_dimension_numbers<[1], [1], [2], [2], [0, 0, 0, 2, 1, 2], [0], [0]>} : vector<4x8x8xbf16>, vector<4x8x8xbf16>, vector<4x8x8xf32> -> vector<4x8x8xf32>
    "tpu.trace_stop"() : () -> ()
    %c0_27 = arith.constant 0 : index
    %c0_28 = arith.constant 0 : index
    %94 = vector.load %arg4[%c0_27, %c0_28] : memref<8x8xf32, #tpu.memory_space<vmem>>, vector<8x8xf32>
    %95 = vector.shape_cast %94 : vector<8x8xf32> to vector<1x8x8xf32>
    %96 = vector.broadcast %95 : vector<1x8x8xf32> to vector<4x8x8xf32>
    %97 = arith.addf %93, %96 : vector<4x8x8xf32>
    %cst_29 = arith.constant dense<0xFF800000> : vector<4x8xf32>
    %98 = vector.multi_reduction <maximumf>, %97, %cst_29 [2] : vector<4x8x8xf32> to vector<4x8xf32>
    %99 = vector.shape_cast %98 : vector<4x8xf32> to vector<4x8x1xf32>
    %100 = vector.broadcast %99 : vector<4x8x1xf32> to vector<4x8x8xf32>
    %101 = arith.subf %97, %100 : vector<4x8x8xf32>
    %102 = math.exp %101 : vector<4x8x8xf32>
    %cst_30 = arith.constant dense<0.000000e+00> : vector<4x8xf32>
    %103 = vector.multi_reduction <add>, %102, %cst_30 [2] : vector<4x8x8xf32> to vector<4x8xf32>
    %104 = vector.shape_cast %103 : vector<4x8xf32> to vector<4x8x1xf32>
    %105 = tpu.reciprocal %104 {approx = true} : vector<4x8x1xf32> -> vector<4x8x1xf32>
    %106 = vector.broadcast %105 : vector<4x8x1xf32> to vector<4x8x8xf32>
    %107 = arith.mulf %102, %106 : vector<4x8x8xf32>
    %108 = arith.truncf %90 : vector<4x8x8xf32> to vector<4x8x8xbf16>
    %109 = arith.truncf %107 : vector<4x8x8xf32> to vector<4x8x8xbf16>
    "tpu.trace_start"() <{level = 10 : i32, message = "hdk,hqk->hdq"}> : () -> ()
    %cst_31 = arith.constant dense<0.000000e+00> : vector<4x8x8xf32>
    %110 = tpu.matmul %108, %109, %cst_31 {dimension_numbers = #tpu.dot_dimension_numbers<[2], [2], [1], [1], [0, 0, 0, 1, 1, 1], [0], [0]>} : vector<4x8x8xbf16>, vector<4x8x8xbf16>, vector<4x8x8xf32> -> vector<4x8x8xf32>
    "tpu.trace_stop"() : () -> ()
    %111 = vector.shape_cast %110 : vector<4x8x8xf32> to vector<32x8xf32>
    %112 = arith.truncf %111 : vector<32x8xf32> to vector<32x8xbf16>
    %c0_32 = arith.constant 0 : index
    %c0_33 = arith.constant 0 : index
    %c0_34 = arith.constant 0 : index
    %113 = vector.load %arg6[%c0_32, %c0_33, %c0_34] : memref<1x32x32xbf16, #tpu.memory_space<vmem>>, vector<1x32x32xbf16>
    %114 = vector.shape_cast %113 : vector<1x32x32xbf16> to vector<32x32xbf16>
    %cst_35 = arith.constant dense<0.000000e+00> : vector<8x32xf32>
    %115 = tpu.matmul %112, %114, %cst_35 {dimension_numbers = #tpu.dot_dimension_numbers<[0], [0], [1], [1], [0, 1, 1, 1], [], []>} : vector<32x8xbf16>, vector<32x32xbf16>, vector<8x32xf32> -> vector<8x32xf32>
    %c8 = arith.constant 8 : index
    %c0_36 = arith.constant 0 : index
    %116 = vector.load %arg15[%c8, %c0_36] : memref<16x32xf32, #tpu.memory_space<vmem>>, vector<8x32xf32>
    tpu.vector_store %arg15[%c8, %c0_36], %115 {strides = array<i32>} : memref<16x32xf32, #tpu.memory_space<vmem>>, vector<8x32xf32>,
    %c0_37 = arith.constant 0 : index
    %c0_38 = arith.constant 0 : index
    %117 = vector.load %arg15[%c0_37, %c0_38] : memref<16x32xf32, #tpu.memory_space<vmem>>, vector<16x32xf32>
    %118 = arith.addf %3, %117 : vector<16x32xf32>
    %119 = vector.broadcast %10 : vector<1x32xf32> to vector<16x32xf32>
    %120 = arith.addf %118, %119 : vector<16x32xf32>
    %cst_39 = arith.constant dense<0.000000e+00> : vector<16xf32>
    %121 = vector.multi_reduction <add>, %120, %cst_39 [1] : vector<16x32xf32> to vector<16xf32>
    %122 = vector.shape_cast %121 : vector<16xf32> to vector<16x1xf32>
    %cst_40 = arith.constant 3.200000e+01 : f32
    %123 = vector.broadcast %cst_40 : f32 to vector<16x1xf32>
    %124 = arith.divf %122, %123 : vector<16x1xf32>
    %125 = vector.broadcast %124 : vector<16x1xf32> to vector<16x32xf32>
    %126 = arith.subf %120, %125 : vector<16x32xf32>
    %127 = arith.mulf %126, %126 : vector<16x32xf32>
    %cst_41 = arith.constant dense<0.000000e+00> : vector<16xf32>
    %128 = vector.multi_reduction <add>, %127, %cst_41 [1] : vector<16x32xf32> to vector<16xf32>
    %129 = vector.shape_cast %128 : vector<16xf32> to vector<16x1xf32>
    %cst_42 = arith.constant 3.200000e+01 : f32
    %130 = vector.broadcast %cst_42 : f32 to vector<16x1xf32>
    %131 = arith.divf %129, %130 : vector<16x1xf32>
    %132 = vector.broadcast %124 : vector<16x1xf32> to vector<16x32xf32>
    %133 = arith.subf %120, %132 : vector<16x32xf32>
    %cst_43 = arith.constant 9.99999974E-6 : f32
    %134 = vector.broadcast %cst_43 : f32 to vector<16x1xf32>
    %135 = arith.addf %131, %134 : vector<16x1xf32>
    %136 = math.rsqrt %135 : vector<16x1xf32>
    %137 = vector.broadcast %136 : vector<16x1xf32> to vector<16x32xf32>
    %138 = arith.mulf %133, %137 : vector<16x32xf32>
    %139 = vector.broadcast %8 : vector<1x32xf32> to vector<16x32xf32>
    %140 = arith.mulf %138, %139 : vector<16x32xf32>
    %141 = vector.broadcast %9 : vector<1x32xf32> to vector<16x32xf32>
    %142 = arith.addf %140, %141 : vector<16x32xf32>
    %143 = arith.truncf %142 : vector<16x32xf32> to vector<16x32xbf16>
    %c0_44 = arith.constant 0 : index
    %c0_45 = arith.constant 0 : index
    %c0_46 = arith.constant 0 : index
    %144 = vector.load %arg7[%c0_44, %c0_45, %c0_46] : memref<1x32x128xbf16, #tpu.memory_space<vmem>>, vector<1x32x128xbf16>
    %145 = vector.shape_cast %144 : vector<1x32x128xbf16> to vector<32x128xbf16>
    %cst_47 = arith.constant dense<0.000000e+00> : vector<16x128xf32>
    %146 = tpu.matmul %143, %145, %cst_47 {dimension_numbers = #tpu.dot_dimension_numbers<[1], [0], [0], [1], [0, 0, 1, 1], [], []>} : vector<16x32xbf16>, vector<32x128xbf16>, vector<16x128xf32> -> vector<16x128xf32>
    %147 = vector.broadcast %12 : vector<1x128xf32> to vector<16x128xf32>
    %148 = arith.addf %146, %147 : vector<16x128xf32>
    %cst_48 = arith.constant 1.702000e+00 : f32
    %149 = vector.broadcast %cst_48 : f32 to vector<16x128xf32>
    %150 = arith.mulf %149, %148 : vector<16x128xf32>
    %151 = arith.negf %150 : vector<16x128xf32>
    %152 = math.exp %151 : vector<16x128xf32>
    %cst_49 = arith.constant 1.000000e+00 : f32
    %153 = vector.broadcast %cst_49 : f32 to vector<16x128xf32>
    %154 = arith.addf %153, %152 : vector<16x128xf32>
    %155 = arith.divf %153, %154 : vector<16x128xf32>
    %156 = arith.mulf %148, %155 : vector<16x128xf32>
    %157 = arith.truncf %156 : vector<16x128xf32> to vector<16x128xbf16>
    %c0_50 = arith.constant 0 : index
    %c0_51 = arith.constant 0 : index
    %c0_52 = arith.constant 0 : index
    %158 = vector.load %arg8[%c0_50, %c0_51, %c0_52] : memref<1x128x32xbf16, #tpu.memory_space<vmem>>, vector<1x128x32xbf16>
    %159 = vector.shape_cast %158 : vector<1x128x32xbf16> to vector<128x32xbf16>
    %cst_53 = arith.constant dense<0.000000e+00> : vector<16x32xf32>
    %160 = tpu.matmul %157, %159, %cst_53 {dimension_numbers = #tpu.dot_dimension_numbers<[1], [0], [0], [1], [0, 0, 1, 1], [], []>} : vector<16x128xbf16>, vector<128x32xbf16>, vector<16x32xf32> -> vector<16x32xf32>
    %161 = arith.addf %120, %160 : vector<16x32xf32>
    %162 = vector.broadcast %11 : vector<1x32xf32> to vector<16x32xf32>
    %163 = arith.addf %161, %162 : vector<16x32xf32>
    %c0_54 = arith.constant 0 : index
    %c0_55 = arith.constant 0 : index
    %164 = vector.load %arg14[%c0_54, %c0_55] : memref<16x32xf32, #tpu.memory_space<vmem>>, vector<16x32xf32>
    tpu.vector_store %arg14[%c0_54, %c0_55], %163 {strides = array<i32>} : memref<16x32xf32, #tpu.memory_space<vmem>>, vector<16x32xf32>,
    %c1_i32 = arith.constant 1 : i32
    %165 = arith.cmpi eq, %arg1, %c1_i32 : i32
    %166 = arith.extui %165 : i1 to i32
    %c0_i32_56 = arith.constant 0 : i32
    %167 = arith.cmpi ne, %166, %c0_i32_56 : i32
    scf.if %167 {
      %c2_i32 = arith.constant 2 : i32
      %168 = arith.muli %arg0, %c2_i32 : i32
      %c0_i32_57 = arith.constant 0 : i32
      %169 = arith.addi %168, %c0_i32_57 : i32
      %170 = arith.index_cast %169 : i32 to index
      %171 = memref.load %arg2[%170] : memref<2xi32, #tpu.memory_space<smem>>
      %c0_i32_58 = arith.constant 0 : i32
      %172 = arith.addi %c0_i32_58, %171 : i32
      %173 = arith.index_cast %172 : i32 to index
      %c0_59 = arith.constant 0 : index
      %174 = vector.load %arg14[%173, %c0_59] : memref<16x32xf32, #tpu.memory_space<vmem>>, vector<1x32xf32>
      %c0_60 = arith.constant 0 : index
      %c0_61 = arith.constant 0 : index
      %175 = vector.load %arg16[%c0_60, %c0_61] : memref<2x32xf32, #tpu.memory_space<vmem>>, vector<1x32xf32>
      tpu.vector_store %arg16[%c0_60, %c0_61], %174 {strides = array<i32>} : memref<2x32xf32, #tpu.memory_space<vmem>>, vector<1x32xf32>,
      %c2_i32_62 = arith.constant 2 : i32
      %176 = arith.muli %arg0, %c2_i32_62 : i32
      %c1_i32_63 = arith.constant 1 : i32
      %177 = arith.addi %176, %c1_i32_63 : i32
      %178 = arith.index_cast %177 : i32 to index
      %179 = memref.load %arg2[%178] : memref<2xi32, #tpu.memory_space<smem>>
      %c8_i32 = arith.constant 8 : i32
      %180 = arith.addi %c8_i32, %179 : i32
      %181 = arith.index_cast %180 : i32 to index
      %c0_64 = arith.constant 0 : index
      %182 = vector.load %arg14[%181, %c0_64] : memref<16x32xf32, #tpu.memory_space<vmem>>, vector<1x32xf32>
      %c1 = arith.constant 1 : index
      %c0_65 = arith.constant 0 : index
      %183 = vector.load %arg16[%c1, %c0_65] : memref<2x32xf32, #tpu.memory_space<vmem>>, vector<1x32xf32>
      tpu.vector_store %arg16[%c1, %c0_65], %182 {strides = array<i32>} : memref<2x32xf32, #tpu.memory_space<vmem>>, vector<1x32xf32>,
      %c0_66 = arith.constant 0 : index
      %c0_67 = arith.constant 0 : index
      %184 = vector.load %arg16[%c0_66, %c0_67] : memref<2x32xf32, #tpu.memory_space<vmem>>, vector<2x32xf32>
      %c0_68 = arith.constant 0 : index
      %c0_69 = arith.constant 0 : index
      %185 = vector.load %arg10[%c0_68, %c0_69] : memref<1x32xf32, #tpu.memory_space<vmem>>, vector<1x32xf32>
      %c0_70 = arith.constant 0 : index
      %c0_71 = arith.constant 0 : index
      %186 = vector.load %arg11[%c0_70, %c0_71] : memref<1x32xf32, #tpu.memory_space<vmem>>, vector<1x32xf32>
      %cst_72 = arith.constant dense<0.000000e+00> : vector<2xf32>
      %187 = vector.multi_reduction <add>, %184, %cst_72 [1] : vector<2x32xf32> to vector<2xf32>
      %188 = vector.shape_cast %187 : vector<2xf32> to vector<2x1xf32>
      %cst_73 = arith.constant 3.200000e+01 : f32
      %189 = vector.broadcast %cst_73 : f32 to vector<2x1xf32>
      %190 = arith.divf %188, %189 : vector<2x1xf32>
      %191 = vector.broadcast %190 : vector<2x1xf32> to vector<2x32xf32>
      %192 = arith.subf %184, %191 : vector<2x32xf32>
      %193 = arith.mulf %192, %192 : vector<2x32xf32>
      %cst_74 = arith.constant dense<0.000000e+00> : vector<2xf32>
      %194 = vector.multi_reduction <add>, %193, %cst_74 [1] : vector<2x32xf32> to vector<2xf32>
      %195 = vector.shape_cast %194 : vector<2xf32> to vector<2x1xf32>
      %cst_75 = arith.constant 3.200000e+01 : f32
      %196 = vector.broadcast %cst_75 : f32 to vector<2x1xf32>
      %197 = arith.divf %195, %196 : vector<2x1xf32>
      %198 = vector.broadcast %190 : vector<2x1xf32> to vector<2x32xf32>
      %199 = arith.subf %184, %198 : vector<2x32xf32>
      %cst_76 = arith.constant 9.99999974E-6 : f32
      %200 = vector.broadcast %cst_76 : f32 to vector<2x1xf32>
      %201 = arith.addf %197, %200 : vector<2x1xf32>
      %202 = math.rsqrt %201 : vector<2x1xf32>
      %203 = vector.broadcast %202 : vector<2x1xf32> to vector<2x32xf32>
      %204 = arith.mulf %199, %203 : vector<2x32xf32>
      %205 = vector.broadcast %185 : vector<1x32xf32> to vector<2x32xf32>
      %206 = arith.mulf %204, %205 : vector<2x32xf32>
      %207 = vector.broadcast %186 : vector<1x32xf32> to vector<2x32xf32>
      %208 = arith.addf %206, %207 : vector<2x32xf32>
      %209 = arith.truncf %208 : vector<2x32xf32> to vector<2x32xbf16>
      %c0_77 = arith.constant 0 : index
      %c0_78 = arith.constant 0 : index
      %210 = vector.load %arg12[%c0_77, %c0_78] : memref<32x32xbf16, #tpu.memory_space<vmem>>, vector<32x32xbf16>
      %cst_79 = arith.constant dense<0.000000e+00> : vector<2x32xf32>
      %211 = tpu.matmul %209, %210, %cst_79 {dimension_numbers = #tpu.dot_dimension_numbers<[1], [0], [0], [1], [0, 0, 1, 1], [], []>} : vector<2x32xbf16>, vector<32x32xbf16>, vector<2x32xf32> -> vector<2x32xf32>
      %c0_80 = arith.constant 0 : index
      %c0_81 = arith.constant 0 : index
      %212 = vector.load %arg13[%c0_80, %c0_81] : memref<2x32xf32, #tpu.memory_space<vmem>>, vector<2x32xf32>
      tpu.vector_store %arg13[%c0_80, %c0_81], %211 {strides = array<i32>} : memref<2x32xf32, #tpu.memory_space<vmem>>, vector<2x32xf32>,
    } else {
    }
    return
  }
  func.func @transform_0(%arg0: i32, %arg1: i32, %arg2: memref<2xi32, #tpu.memory_space<smem>>) -> (i32, i32) {
    %c0_i32 = arith.constant 0 : i32
    %c0_i32_0 = arith.constant 0 : i32
    return %arg0, %c0_i32 : i32, i32
  }
  func.func @transform_1(%arg0: i32, %arg1: i32, %arg2: memref<2xi32, #tpu.memory_space<smem>>) -> (i32, i32) {
    %c0_i32 = arith.constant 0 : i32
    %c0_i32_0 = arith.constant 0 : i32
    %c0_i32_1 = arith.constant 0 : i32
    return %c0_i32, %c0_i32_0 : i32, i32
  }
  func.func @transform_2(%arg0: i32, %arg1: i32, %arg2: memref<2xi32, #tpu.memory_space<smem>>) -> (i32, i32, i32) {
    %c0_i32 = arith.constant 0 : i32
    %c0_i32_0 = arith.constant 0 : i32
    %c0_i32_1 = arith.constant 0 : i32
    return %arg1, %c0_i32, %c0_i32_0 : i32, i32, i32
  }
  func.func @transform_3(%arg0: i32, %arg1: i32, %arg2: memref<2xi32, #tpu.memory_space<smem>>) -> (i32, i32, i32) {
    %c0_i32 = arith.constant 0 : i32
    %c0_i32_0 = arith.constant 0 : i32
    %c0_i32_1 = arith.constant 0 : i32
    return %arg1, %c0_i32, %c0_i32_0 : i32, i32, i32
  }
  func.func @transform_4(%arg0: i32, %arg1: i32, %arg2: memref<2xi32, #tpu.memory_space<smem>>) -> (i32, i32, i32) {
    %c0_i32 = arith.constant 0 : i32
    %c0_i32_0 = arith.constant 0 : i32
    %c0_i32_1 = arith.constant 0 : i32
    return %arg1, %c0_i32, %c0_i32_0 : i32, i32, i32
  }
  func.func @transform_5(%arg0: i32, %arg1: i32, %arg2: memref<2xi32, #tpu.memory_space<smem>>) -> (i32, i32, i32) {
    %c0_i32 = arith.constant 0 : i32
    %c0_i32_0 = arith.constant 0 : i32
    %c0_i32_1 = arith.constant 0 : i32
    return %arg1, %c0_i32, %c0_i32_0 : i32, i32, i32
  }
  func.func @transform_6(%arg0: i32, %arg1: i32, %arg2: memref<2xi32, #tpu.memory_space<smem>>) -> (i32, i32, i32) {
    %c0_i32 = arith.constant 0 : i32
    %c0_i32_0 = arith.constant 0 : i32
    %c0_i32_1 = arith.constant 0 : i32
    return %arg1, %c0_i32, %c0_i32_0 : i32, i32, i32
  }
  func.func @transform_7(%arg0: i32, %arg1: i32, %arg2: memref<2xi32, #tpu.memory_space<smem>>) -> (i32, i32) {
    %c0_i32 = arith.constant 0 : i32
    %c0_i32_0 = arith.constant 0 : i32
    %c0_i32_1 = arith.constant 0 : i32
    return %c0_i32, %c0_i32_0 : i32, i32
  }
  func.func @transform_8(%arg0: i32, %arg1: i32, %arg2: memref<2xi32, #tpu.memory_space<smem>>) -> (i32, i32) {
    %c0_i32 = arith.constant 0 : i32
    %c0_i32_0 = arith.constant 0 : i32
    %c0_i32_1 = arith.constant 0 : i32
    return %c0_i32, %c0_i32_0 : i32, i32
  }
  func.func @transform_9(%arg0: i32, %arg1: i32, %arg2: memref<2xi32, #tpu.memory_space<smem>>) -> (i32, i32) {
    %c0_i32 = arith.constant 0 : i32
    %c0_i32_0 = arith.constant 0 : i32
    %c0_i32_1 = arith.constant 0 : i32
    return %c0_i32, %c0_i32_0 : i32, i32
  }
  func.func @transform_10(%arg0: i32, %arg1: i32, %arg2: memref<2xi32, #tpu.memory_space<smem>>) -> (i32, i32) {
    %c0_i32 = arith.constant 0 : i32
    %c0_i32_0 = arith.constant 0 : i32
    return %arg0, %c0_i32 : i32, i32
  }
}

</mosaic_0001>

<bundles_post_ra>
// kernel: tpu_custom_call.1
= control target key start
LH: loop header
LB: loop body
LE: loop exit
PB: predicated region body
PF: predicated region fallthrough
CT: control target
= control target key end

     0   :  { %s3262_s0 = inlined_call_operand.vmem [shape: s32[2], index: 0, kind: input, shape index: {}]   ;;  %s3263_s1 = inlined_call_operand.vmem [shape: f32[16,32], index: 1, kind: input, shape index: {}]   ;;  %s3264_s2 = inlined_call_operand.vmem [shape: f32[8,8], index: 2, kind: input, shape index: {}]   ;;  %s3265_s3 = inlined_call_operand.vmem [shape: bf16[2,32,96], index: 3, kind: input, shape index: {}]   ;;  %s3266_s4 = inlined_call_operand.vmem [shape: bf16[2,32,32], index: 4, kind: input, shape index: {}]   ;;  %s3267_s5 = inlined_call_operand.vmem [shape: bf16[2,32,128], index: 5, kind: input, shape index: {}]   ;;  %s3268_s6 = inlined_call_operand.vmem [shape: bf16[2,128,32], index: 6, kind: input, shape index: {}]   ;;  %s3269_s7 = inlined_call_operand.vmem [shape: f32[2,8,128], index: 7, kind: input, shape index: {}]   ;;  %s3270_s8 = inlined_call_operand.vmem [shape: f32[1,32], index: 8, kind: input, shape index: {}]   ;;  %s3271_s9 = inlined_call_operand.vmem [shape: f32[1,32], index: 9, kind: input, shape index: {}]   ;;  %s3272_s10 = inlined_call_operand.vmem [shape: bf16[32,32], index: 10, kind: input, shape index: {}]   ;;  %s3273_s11 = inlined_call_operand.hbm [shape: f32[2,32], index: 11, kind: output, shape index: {}]  }
   0x1   :  { %s16_s19 = sshll.u32 %s3262_s0, 4  ;;  %s17_s19 = int_to_ptr.vmem [resolvable:$true] %s16_s19 }
   0x2   :  { %s2805_s20 = scalar_lea.vmem %s17_s19, 16  ;;  %p2810_p1 = scmp.lt.s32.totalorder %s17_s19, %s17_s19 }
   0x3   :  { %p2806_p0 = scmp.ne.s32.totalorder %s17_s19, %s2805_s20  ;;  %p2811_p2 = scmp.lt.s32.totalorder %s2805_s20, %s2805_s20 }
   0x5   :  { %p2812_p3 = por %p2811_p2, %p2810_p1 }
   0x7   :  { %p2813_p4 = pnand %p2812_p3, %p2806_p0 }
   0x9   :  { %2816 = shalt.err (!%p2813_p4)  }
   0xa   :  { %s2871_s21 = smov [#allocation6]  }
   0xb   :  { %19 = dma.vmem_to_smem %s17_s19, 16, %s2871_s21, [#allocation5] }
   0xc   :  { %2853 = dma.done.wait [#allocation5], 16 }
   0xd   :  { %2854 = vsyncadd [#allocation5], 4294967280 }
   0xe   :  { %21 = sfence }
   0xf   :  { %22 = vsyncpa [#allocation8], 0  ;;  %s2942_s22 = smov 0   ;;  %s2944_s23 = smov 0  }
  0x10   :  { %s2946_s24 = smov 0  }
  0x11 LB: > { %s37_s25 = sadd.s32 1, %s2865_s23  ;;  %p2421_p6 = scmp.ge.s32.totalorder %s2869_s24, 1  ;;  %s2869_s24 = sphi %s2946_s24, %s28_s24   ;;  %s2865_s23 = sphi %s2944_s23, %s3279_s23   ;;  %s2861_s22 = sphi %s2942_s22, %s3278_s22  }
  0x12   : > { %p38_p5 = scmp.ge.s32.totalorder %s37_s25, 2  ;;  %p382_p7 = scmp.lt.s32.totalorder %s2869_s24, 3 }
  0x14   : > { %s3281_s25 = smov (%p38_p5, %s37_s25), 0  ;;  %p383_p8 = pnand %p2421_p6, %p382_p7 }
  0x15   : > { %3274 = sst [smem:[#allocation11_spill]] %s3281_s25  ;;  %p445_p9 = scmp.lt.s32.totalorder (!%p383_p8), %s2861_s22, 1 }
  0x16   : > { %386 = sbr.rel (%p383_p8) target bundleno = 4067 (0xfe3), region = 60  ;;  %p2431_p10 = scmp.ne.s32.totalorder (!%p383_p8), %s2861_s22, 0 }
  0x1b   : > { %s446_s26 = scalar_select %p445_p9, %s2861_s22, 1 }
  0x1d   : > { %s2482_s27 = sshll.u32 %s446_s26, 4  ;;  %s2485_s28 = sshll.u32 %s446_s26, 6 }
  0x1e   : > { %s2968_s12 = scalar_lea.vmem %s3265_s3, %s2482_s27  ;;  %s2973_s15 = scalar_lea.vmem %s3266_s4, %s2482_s27 }
  0x1f   : > { %s2978_s18 = scalar_lea.vmem %s3267_s5, %s2482_s27  ;;  %s2983_s21 = scalar_lea.vmem %s3268_s6, %s2485_s28 }
  0x20   : > { %s2430_s0 = sshll.u32 %s446_s26, 3  ;;  %473 = sbr.rel (%p2431_p10) target bundleno = 39 (0x27), region = 64 }
  0x21   : > { %s2988_s30 = scalar_lea.vmem %s3269_s7, %s2430_s0 }
  0x25   : > { %v474_v0 = vld [vmem:[%s3263_s1] sm:$0xff]  ;;  %vm476_vm0 = vcmask 261120   ;;  %v475_v1 = vld [vmem:[%s3263_s1 + $0x8] sm:$0xff] }
  0x26   : > { %477 = vst.msk [vmem:[#allocation2] sm:$0xff] %vm476_vm0, %v474_v0  ;;  %478 = vst.msk [vmem:[#allocation2 + $0x8] sm:$0xff] %vm476_vm0, %v475_v1 }
  0x27 PF: > { %vm482_vm1 = vcmask 261120   ;;  %v2737_v16 = vld [vmem:[%s2968_s12 + $0x8] sm:$0xff]   ;;  %v2872_v17 = vmov 0.0   ;;  %vm2873_vm2 = vmmov 0   ;;  %v2738_v18 = vld [vmem:[%s2968_s12] sm:$0xff]   ;;  %v510_v25 = vlaneseq  ;;  %s2874_s0 = smov 96  }
  0x28   : > { %2542 = vmatprep.subr.bf16.mxu0 %v2872_v17  ;;  %2546 = vmatprep.mubr.msk.bf16.mxu0 %vm2873_vm2, %v2872_v17  ;;  %v3023_v28 = vld [vmem:[%s2988_s30] sm:$0xff]  ;;  %vm721_vm3 = vcmask 1043456   ;;  %vm717_vm4 = vcmask 64512   ;;  %s2875_s28 = smov 64   ;;  %p2470_p11 = scmp.ne.s32.totalorder %s2861_s22, 1 }
  0x29   : > { %2543 = vmatpush3.bf16.msra.mxu0 %v2737_v16  ;;  %2568 = vmatprep.subr.bf16.mxu1 %v2872_v17  ;;  %v3019_v26 = vshrl.u32 %v510_v25, 7  ;;  %s2189_s12 = sld [smem:[#allocation6]] (!%p2470_p11) }
  0x2a   : > { %2544 = vmatprep.subr.bf16.mxu0 %v2872_v17  ;;  %2570 = vmatprep.mubr.msk.bf16.mxu1 %vm2873_vm2, %v2872_v17 }
  0x2b   : > { %v512_v27 = vsub.s32 0, %v3019_v26  ;;  %v518_v32 = vsub.s32 1, %v3019_v26  ;;  %v529_v41 = vsub.s32 7, %v3019_v26 }
  0x2d   : > { %v2997_v2 = vld [vmem:[#allocation2] sm:$0xff]  ;;  %v2999_v3 = vld [vmem:[#allocation2 + $0x8] sm:$0xff]  ;;  %2545 = vmatpush3.bf16.msra.mxu0 %v2738_v18  ;;  %v513_v31 = vrot.slane %v3023_v28, %v512_v27  ;;  %v519_v36 = vrot.slane %v3023_v28, %v518_v32  ;;  %v530_v42 = vrot.slane %v3023_v28, %v529_v41 }
  0x2e   : > { %v483_v4 = vsel %vm482_vm1, %v2997_v2, 0.0  ;;  %v486_v5 = vsel %vm482_vm1, %v2999_v3, 0.0  ;;  %2550 = vmatprep.subr.bf16.mxu0 %v2872_v17 }
  0x2f   : > { %484 = vadd.xlane.f32.xlu0 %v483_v4  ;;  %s2190_s17 = scalar_lea.vmem (!%p2470_p11), [#allocation2], %s2189_s12 }
  0x33   : > { %487 = vadd.xlane.f32.xlu0 %v486_v5 }
  0xb8   : > { %v485_v6 = vpop.xlane.xlu0 %484 }
  0xb9   : > { %v490_v7 = vmul.f32 0.03125, %v485_v6 }
  0xbb   : > { %v492_v8 = vsub.f32 %v2997_v2, %v490_v7 }
  0xbc   : > { %v488_v9 = vpop.xlane.xlu0 %487 }
  0xbd   : > { %v491_v10 = vmul.f32 0.03125, %v488_v9  ;;  %v494_v11 = vmul.f32 %v492_v8, %v492_v8 }
  0xbf   : > { %v493_v12 = vsub.f32 %v2999_v3, %v491_v10  ;;  %v496_v13 = vsel %vm482_vm1, %v494_v11, 0.0 }
  0xc0   : > { %497 = vadd.xlane.f32.xlu1 %v496_v13  ;;  %v3063_v13 = vld [vmem:[%s3264_s2] sm:$0xff] }
  0xc1   : > { %v495_v14 = vmul.f32 %v493_v12, %v493_v12 }
  0xc3   : > { %v499_v15 = vsel %vm482_vm1, %v495_v14, 0.0 }
  0xc4   : > { %500 = vadd.xlane.f32.xlu1 %v499_v15 }
 0x149   : > { %v498_v19 = vpop.xlane.xlu1 %497 }
 0x14a   : > { %v502_v20 = vmul.f32 0.03125, %v498_v19 }
 0x14c   : > { %v504_v21 = vadd.f32 1e-05, %v502_v20 }
 0x14d   : > { %v501_v22 = vpop.xlane.xlu1 %500 }
 0x14e   : > { %2753 = vrsqrt.f32 %v504_v21  ;;  %v503_v23 = vmul.f32 0.03125, %v501_v22 }
 0x150   : > { %v505_v24 = vadd.f32 1e-05, %v503_v23 }
 0x152   : > { %2755 = vrsqrt.f32 %v505_v24 }
 0x15b   : > { %v2754_v29 = vpop.eup %2753 }
 0x15c   : > { %v508_v30 = vmul.f32 %v2754_v29, %v492_v8 }
 0x15e   : > { %v514_v35 = vmul.f32 %v513_v31, %v508_v30 }
 0x15f   : > { %v2756_v33 = vpop.eup %2755 }
 0x160   : > { %v509_v34 = vmul.f32 %v2756_v33, %v493_v12  ;;  %v520_v38 = vadd.f32 %v519_v36, %v514_v35 }
 0x162   : > { %v515_v37 = vmul.f32 %v513_v31, %v509_v34 }
 0x164   : > { %v521_v39 = vadd.f32 %v519_v36, %v515_v37 }
 0x166   : > { %v522_v40 = vpack.c.bf16 %v521_v39, %v520_v38 }
 0x168   : > { %2547 = vmatmul.mubr.msk.bf16.vlgmr.msra.gmra.mxu0 %vm482_vm1, %v522_v40 }
 0x169   : > { %2552 = vmatprep.mubr.msk.bf16.mxu0 %vm2873_vm2, %v2872_v17 }
 0x228   : > { %v580_v43 = vpop.f32.mrf.mxu0 }
 0x229   : > { %v3033_v44 = vadd.f32 %v580_v43, %v530_v42 }
 0x22a   : > { %v2548_v45 = vpop.f32.mrf.mxu0 }
 0x22b   : > { %622 = vrot.lane.b32.xlu0 %v3033_v44, %s2874_s0  ;;  %v587_v46 = vmul.f32 0.35355338, %v3033_v44 }
 0x22c   : > { %v583_v47 = vpop.f32.mrf.mxu0 }
 0x22d   : > { %v3038_v48 = vadd.f32 %v583_v47, %v530_v42  ;;  %589 = vxpose.xlu1.b32.start.end [1/1] (short) (narrow) %v587_v46, 32 }
 0x22e   : > { %v2549_v49 = vpop.f32.mrf.mxu0 }
 0x29d   : > { %v623_v50 = vpop.permute.xlu0 %622 }
 0x29e   : > { %625 = vxpose.xlu0.b32.start.end [1/1] (short) (narrow) %v623_v50, 32 }
 0x2a9   : > { %v605_v51 = vpop.trf.xlu1 }
 0x2aa   : > { %v692_v52 = vpack.c.bf16 %v605_v51, %v605_v51 }
 0x2ac   : > { %701 = vxpose.xlu1.c.b16.start.end [1/1] (short) (narrow) %v692_v52, 16 }
 0x2ad   : > { %v606_v53 = vpop.trf.xlu1 }
 0x2ae   : > { %v693_v58 = vpack.c.bf16 %v606_v53, %v606_v53 }
 0x2b1   : > { %v607_v54 = vpop.trf.xlu1 }
 0x2b2   : > { %v694_v55 = vpack.c.bf16 %v607_v54, %v607_v54 }
 0x2b4   : > { %827 = vxpose.xlu1.c.b16.start.end [1/1] (short) (narrow) %v694_v55, 16 }
 0x2b5   : > { %v608_v56 = vpop.trf.xlu1 }
 0x2b6   : > { %v695_v57 = vpack.c.bf16 %v608_v56, %v608_v56 }
 0x2b8   : > { %889 = vxpose.xlu1.c.b16.start.end [1/1] (short) (narrow) %v695_v57, 16 }
 0x2ce   : > { %765 = vxpose.xlu0.c.b16.start.end [1/1] (short) (narrow) %v693_v58, 16 }
 0x30e   : > { %v709_v62 = vpop.trf.xlu1 }
 0x316   : > { %v835_v5 = vpop.trf.xlu1 }
 0x31a   : > { %v641_v59 = vpop.trf.xlu0  ;;  %v897_v9 = vpop.trf.xlu1 }
 0x31b   : > { %v696_v60 = vpack.c.bf16 %v641_v59, %v641_v59 }
 0x31d   : > { %v723_v61 = vsel %vm721_vm3, %v696_v60, 0 }
 0x31e   : > { %2551 = vmatpush3.bf16.msra.mxu0 %v723_v61  ;;  %v642_v63 = vpop.trf.xlu0 }
 0x31f   : > { %v697_v0 = vpack.c.bf16 %v642_v63, %v642_v63  ;;  %2556 = vmatprep.subr.bf16.mxu0 %v2872_v17  ;;  %v588_v63 = vmul.f32 0.35355338, %v3038_v48 }
 0x321   : > { %2553 = vmatmul.mubr.msk.bf16.vlgmr.msra.gmra.mxu0 %vm717_vm4, %v709_v62  ;;  %v785_v1 = vsel %vm721_vm3, %v697_v0, 0 }
 0x322   : > { %v643_v4 = vpop.trf.xlu0  ;;  %2557 = vmatpush3.bf16.msra.mxu0 %v785_v1  ;;  %2558 = vmatprep.mubr.msk.bf16.mxu0 %vm2873_vm2, %v2872_v17 }
 0x323   : > { %2562 = vmatprep.subr.bf16.mxu0 %v2872_v17  ;;  %v698_v10 = vpack.c.bf16 %v643_v4, %v643_v4 }
 0x325   : > { %v847_v11 = vsel %vm721_vm3, %v698_v10, 0 }
 0x326   : > { %v644_v6 = vpop.trf.xlu0 }
 0x327   : > { %v699_v7 = vpack.c.bf16 %v644_v6, %v644_v6 }
 0x329   : > { %v909_v8 = vsel %vm721_vm3, %v699_v7, 0 }
 0x32a   : > { %2569 = vmatpush3.bf16.msra.mxu1 %v909_v8 }
 0x32b   : > { %2580 = vmatprep.subr.bf16.mxu1 %v2872_v17 }
 0x32d   : > { %2571 = vmatmul.mubr.msk.bf16.vlgmr.msra.gmra.mxu1 %vm717_vm4, %v897_v9 }
 0x32e   : > { %2582 = vmatprep.mubr.msk.bf16.mxu1 %vm2873_vm2, %v2872_v17 }
 0x330   : > { %v773_v12 = vpop.trf.xlu0 }
 0x331   : > { %2559 = vmatmul.mubr.msk.bf16.vlgmr.msra.gmra.mxu0 %vm717_vm4, %v773_v12 }
 0x332   : > { %2563 = vmatpush3.bf16.msra.mxu0 %v847_v11  ;;  %2564 = vmatprep.mubr.msk.bf16.mxu0 %vm2873_vm2, %v2872_v17 }
 0x333   : > { %2574 = vmatprep.subr.bf16.mxu0 %v2872_v17 }
 0x339   : > { %2565 = vmatmul.mubr.msk.bf16.vlgmr.msra.gmra.mxu0 %vm717_vm4, %v835_v5 }
 0x33a   : > { %2576 = vmatprep.mubr.msk.bf16.mxu0 %vm2873_vm2, %v2872_v17 }
 0x3e1   : > { %v759_v14 = vpop.f32.mrf.mxu0 }
 0x3e2   : > { %v760_v15 = vadd.f32 %v759_v14, %v3063_v13 }
 0x3e3   : > { %v2554_v16 = vpop.f32.mrf.mxu0 }
 0x3e4   : > { %v951_v18 = vsel %vm717_vm4, %v760_v15, -inf }
 0x3e5   : > { %952 = vmax.xlane.f32.xlu0 %v951_v18  ;;  %v762_v19 = vpop.f32.mrf.mxu0 }
 0x3e7   : > { %v2555_v20 = vpop.f32.mrf.mxu0 }
 0x3ed   : > { %v945_v21 = vpop.f32.mrf.mxu1 }
 0x3ee   : > { %v946_v27 = vadd.f32 %v945_v21, %v3063_v13 }
 0x3ef   : > { %v2572_v22 = vpop.f32.mrf.mxu1 }
 0x3f0   : > { %v960_v33 = vsel %vm717_vm4, %v946_v27, -inf }
 0x3f1   : > { %v821_v23 = vpop.f32.mrf.mxu0  ;;  %v948_v24 = vpop.f32.mrf.mxu1 }
 0x3f2   : > { %v822_v25 = vadd.f32 %v821_v23, %v3063_v13 }
 0x3f3   : > { %v2560_v29 = vpop.f32.mrf.mxu0  ;;  %v2573_v30 = vpop.f32.mrf.mxu1 }
 0x3f4   : > { %v954_v31 = vsel %vm717_vm4, %v822_v25, -inf }
 0x3f5   : > { %955 = vmax.xlane.f32.xlu1 %v954_v31  ;;  %v824_v32 = vpop.f32.mrf.mxu0 }
 0x3f7   : > { %v2561_v34 = vpop.f32.mrf.mxu0 }
 0x3f9   : > { %961 = vmax.xlane.f32.xlu1 %v960_v33  ;;  %v883_v35 = vpop.f32.mrf.mxu0 }
 0x3fa   : > { %v884_v36 = vadd.f32 %v883_v35, %v3063_v13 }
 0x3fb   : > { %v2566_v37 = vpop.f32.mrf.mxu0 }
 0x3fc   : > { %v957_v38 = vsel %vm717_vm4, %v884_v36, -inf }
 0x3fd   : > { %958 = vmax.xlane.f32.xlu0 %v957_v38  ;;  %v886_v39 = vpop.f32.mrf.mxu0 }
 0x3ff   : > { %v2567_v40 = vpop.f32.mrf.mxu0 }
 0x46e   : > { %v953_v41 = vpop.xlane.xlu0 %952 }
 0x46f   : > { %v963_v42 = vsub.f32 %v760_v15, %v953_v41 }
 0x471   : > { %v967_v43 = vmul.f32 1.442695, %v963_v42 }
 0x473   : > { %2757 = vpow2.f32 %v967_v43 }
 0x47e   : > { %v956_v45 = vpop.xlane.xlu1 %955 }
 0x47f   : > { %v964_v46 = vsub.f32 %v822_v25, %v956_v45 }
 0x480   : > { %v2758_v47 = vpop.eup %2757 }
 0x481   : > { %v969_v49 = vmul.f32 1.442695, %v964_v46  ;;  %v975_v50 = vsel %vm717_vm4, %v2758_v47, 0.0 }
 0x482   : > { %v962_v51 = vpop.xlane.xlu1 %961  ;;  %976 = vadd.xlane.f32.xlu0 %v975_v50 }
 0x483   : > { %2759 = vpow2.f32 %v969_v49  ;;  %v966_v52 = vsub.f32 %v946_v27, %v962_v51 }
 0x485   : > { %v973_v53 = vmul.f32 1.442695, %v966_v52  ;;  %v2739_v52 = vld [vmem:[%s2973_s15 + $0x8] sm:$0xff]  }
 0x486   : > { %v959_v54 = vpop.xlane.xlu0 %958 }
 0x487   : > { %2761 = vpow2.f32 %v973_v53  ;;  %v965_v55 = vsub.f32 %v884_v36, %v959_v54  ;;  %v2740_v53 = vld [vmem:[%s2973_s15] sm:$0xff]  }
 0x489   : > { %v971_v56 = vmul.f32 1.442695, %v965_v55 }
 0x48b   : > { %2763 = vpow2.f32 %v971_v56 }
 0x490   : > { %v2760_v57 = vpop.eup %2759 }
 0x491   : > { %v978_v58 = vsel %vm717_vm4, %v2760_v57, 0.0 }
 0x492   : > { %979 = vadd.xlane.f32.xlu1 %v978_v58 }
 0x494   : > { %v2762_v59 = vpop.eup %2761 }
 0x495   : > { %v984_v60 = vsel %vm717_vm4, %v2762_v59, 0.0 }
 0x496   : > { %985 = vadd.xlane.f32.xlu1 %v984_v60 }
 0x498   : > { %v2764_v61 = vpop.eup %2763  ;;  %657 = vrot.lane.b32.xlu0 %v3033_v44, %s2875_s28 }
 0x499   : > { %v981_v62 = vsel %vm717_vm4, %v2764_v61, 0.0 }
 0x49a   : > { %982 = vadd.xlane.f32.xlu1 %v981_v62 }
 0x49c   : > { %1298 = vrot.lane.b32.xlu0 %v3038_v48, %s2874_s0 }
 0x4ba   : > { %1265 = vxpose.xlu0.b32.start.end [1/1] (short) (narrow) %v588_v63, 32 }
 0x50b   : > { %v977_v0 = vpop.xlane.xlu0 %976 }
 0x50c   : > { %2765 = vrcp.f32 %v977_v0 }
 0x50f   : > { %v658_v1 = vpop.permute.xlu0 %657 }
 0x510   : > { %660 = vxpose.xlu1.b32.start.end [1/1] (short) (narrow) %v658_v1, 32 }
 0x513   : > { %v1299_v7 = vpop.permute.xlu0 %1298 }
 0x519   : > { %v2766_v4 = vpop.eup %2765 }
 0x51a   : > { %v991_v5 = vmul.f32 %v2766_v4, %v2758_v47 }
 0x51b   : > { %v980_v6 = vpop.xlane.xlu1 %979 }
 0x51c   : > { %2767 = vrcp.f32 %v980_v6  ;;  %v999_v8 = vpack.c.bf16 %v991_v5, %v991_v5 }
 0x51d   : > { %1301 = vxpose.xlu1.b32.start.end [1/1] (short) (narrow) %v1299_v7, 32 }
 0x51e   : > { %v1007_v44 = vsel %vm717_vm4, %v999_v8, 0 }
 0x51f   : > { %2575 = vmatpush3.bf16.xpose.msra.mxu0 %v1007_v44  ;;  %v986_v16 = vpop.xlane.xlu1 %985 }
 0x520   : > { %2586 = vmatprep.subr.bf16.mxu0 %v2872_v17 }
 0x523   : > { %v983_v18 = vpop.xlane.xlu1 %982 }
 0x524   : > { %2769 = vrcp.f32 %v983_v18 }
 0x525   : > { %2771 = vrcp.f32 %v986_v16 }
 0x529   : > { %v2768_v9 = vpop.eup %2767 }
 0x52a   : > { %v992_v10 = vmul.f32 %v2768_v9, %v2760_v57 }
 0x52c   : > { %v1000_v11 = vpack.c.bf16 %v992_v10, %v992_v10 }
 0x52e   : > { %v1053_v12 = vsel %vm717_vm4, %v1000_v11, 0 }
 0x52f   : > { %2581 = vmatpush3.bf16.xpose.msra.mxu1 %v1053_v12 }
 0x530   : > { %2592 = vmatprep.subr.bf16.mxu1 %v2872_v17 }
 0x531   : > { %v2770_v19 = vpop.eup %2769 }
 0x532   : > { %v993_v20 = vmul.f32 %v2770_v19, %v2764_v61  ;;  %v2772_v21 = vpop.eup %2771 }
 0x533   : > { %v994_v23 = vmul.f32 %v2772_v21, %v2762_v59 }
 0x534   : > { %v1001_v22 = vpack.c.bf16 %v993_v20, %v993_v20 }
 0x535   : > { %v1002_v29 = vpack.c.bf16 %v994_v23, %v994_v23 }
 0x536   : > { %v1281_v14 = vpop.trf.xlu0  ;;  %v1099_v27 = vsel %vm717_vm4, %v1001_v22, 0 }
 0x537   : > { %v1368_v15 = vpack.c.bf16 %v1281_v14, %v1281_v14  ;;  %v1145_v32 = vsel %vm717_vm4, %v1002_v29, 0 }
 0x53a   : > { %v1282_v47 = vpop.trf.xlu0 }
 0x53b   : > { %v1369_v8 = vpack.c.bf16 %v1282_v47, %v1282_v47 }
 0x53e   : > { %v1283_v49 = vpop.trf.xlu0 }
 0x53f   : > { %v1370_v10 = vpack.c.bf16 %v1283_v49, %v1283_v49 }
 0x542   : > { %v1284_v50 = vpop.trf.xlu0 }
 0x543   : > { %v1371_v51 = vpack.c.bf16 %v1284_v50, %v1284_v50 }
 0x547   : > { %1377 = vxpose.xlu1.c.b16.start.end [1/1] (short) (narrow) %v1368_v15, 16 }
 0x54b   : > { %1563 = vxpose.xlu1.c.b16.start.end [1/1] (short) (narrow) %v1371_v51, 16 }
 0x58c   : > { %v676_v24 = vpop.trf.xlu1 }
 0x58d   : > { %v995_v25 = vpack.c.bf16 %v676_v24, %v676_v24 }
 0x58f   : > { %2577 = vmatmul.mubr.msk.bf16.vlgmr.msra.gmra.mxu0 %vm717_vm4, %v995_v25 }
 0x590   : > { %2587 = vmatpush3.bf16.xpose.msra.mxu0 %v1099_v27  ;;  %v677_v30 = vpop.trf.xlu1  ;;  %2588 = vmatprep.mubr.msk.bf16.mxu0 %vm2873_vm2, %v2872_v17 }
 0x591   : > { %v996_v31 = vpack.c.bf16 %v677_v30, %v677_v30  ;;  %2598 = vmatprep.subr.bf16.mxu0 %v2872_v17 }
 0x593   : > { %2583 = vmatmul.mubr.msk.bf16.vlgmr.msra.gmra.mxu1 %vm717_vm4, %v996_v31 }
 0x594   : > { %2593 = vmatpush3.bf16.xpose.msra.mxu1 %v1145_v32  ;;  %v678_v33 = vpop.trf.xlu1  ;;  %2594 = vmatprep.mubr.msk.bf16.mxu1 %vm2873_vm2, %v2872_v17 }
 0x595   : > { %v997_v34 = vpack.c.bf16 %v678_v33, %v678_v33  ;;  %2606 = vmatprep.subr.bf16.mxu1 %v2872_v17 }
 0x597   : > { %2589 = vmatmul.mubr.msk.bf16.vlgmr.msra.gmra.mxu0 %vm717_vm4, %v997_v34 }
 0x598   : > { %v679_v35 = vpop.trf.xlu1  ;;  %2602 = vmatprep.mubr.msk.bf16.mxu0 %vm2873_vm2, %v2872_v17  ;;  %2599 = vmatpush3.bf16.msra.mxu0 %v2739_v52 }
 0x599   : > { %v998_v36 = vpack.c.bf16 %v679_v35, %v679_v35  ;;  %2600 = vmatprep.subr.bf16.mxu0 %v2872_v17 }
 0x59b   : > { %2595 = vmatmul.mubr.msk.bf16.vlgmr.msra.gmra.mxu1 %vm717_vm4, %v998_v36 }
 0x59c   : > { %v1317_v37 = vpop.trf.xlu1  ;;  %2608 = vmatprep.mubr.msk.bf16.mxu1 %vm2873_vm2, %v2872_v17  ;;  %2601 = vmatpush3.bf16.msra.mxu0 %v2740_v53 }
 0x59d   : > { %v1372_v38 = vpack.c.bf16 %v1317_v37, %v1317_v37  ;;  %2612 = vmatprep.subr.bf16.mxu0 %v2872_v17 }
 0x59f   : > { %v1397_v39 = vsel %vm721_vm3, %v1372_v38, 0 }
 0x5a0   : > { %v1318_v40 = vpop.trf.xlu1  ;;  %2607 = vmatpush3.bf16.msra.mxu1 %v1397_v39 }
 0x5a1   : > { %2618 = vmatprep.subr.bf16.mxu1 %v2872_v17  ;;  %v1373_v19 = vpack.c.bf16 %v1318_v40, %v1318_v40 }
 0x5a3   : > { %v1459_v21 = vsel %vm721_vm3, %v1373_v19, 0 }
 0x5a4   : > { %v1319_v41 = vpop.trf.xlu1 }
 0x5a5   : > { %v1374_v42 = vpack.c.bf16 %v1319_v41, %v1319_v41 }
 0x5a7   : > { %v1521_v45 = vsel %vm721_vm3, %v1374_v42, 0 }
 0x5a8   : > { %v1320_v43 = vpop.trf.xlu1 }
 0x5a9   : > { %v1375_v22 = vpack.c.bf16 %v1320_v43, %v1320_v43 }
 0x5ab   : > { %v1583_v24 = vsel %vm721_vm3, %v1375_v22, 0 }
 0x5ac   : > { %v1385_v46 = vpop.trf.xlu1 }
 0x5ad   : > { %2609 = vmatmul.mubr.msk.bf16.vlgmr.msra.gmra.mxu1 %vm717_vm4, %v1385_v46 }
 0x5ae   : > { %2619 = vmatpush3.bf16.msra.mxu1 %v1521_v45  ;;  %2620 = vmatprep.mubr.msk.bf16.mxu1 %vm2873_vm2, %v2872_v17 }
 0x5af   : > { %2630 = vmatprep.subr.bf16.mxu1 %v2872_v17 }
 0x5b0   : > { %v1571_v27 = vpop.trf.xlu1 }
 0x64f   : > { %v1043_v54 = vpop.f32.mrf.mxu0 }
 0x651   : > { %v2578_v55 = vpop.f32.mrf.mxu0 }
 0x653   : > { %v1046_v56 = vpop.f32.mrf.mxu0  ;;  %v1089_v57 = vpop.f32.mrf.mxu1 }
 0x654   : > { %v1187_v58 = vpack.c.bf16 %v1089_v57, %v1043_v54 }
 0x655   : > { %v2579_v59 = vpop.f32.mrf.mxu0  ;;  %v2584_v60 = vpop.f32.mrf.mxu1 }
 0x656   : > { %1193 = vxpose.xlu0.c.b16.start [1/2] (short) (narrow) %v1187_v58, 16 }
 0x657   : > { %v1092_v61 = vpop.f32.mrf.mxu1  ;;  %v1135_v62 = vpop.f32.mrf.mxu0 }
 0x659   : > { %v2585_v63 = vpop.f32.mrf.mxu1  ;;  %v2590_v0 = vpop.f32.mrf.mxu0 }
 0x65b   : > { %v1138_v1 = vpop.f32.mrf.mxu0  ;;  %v1181_v4 = vpop.f32.mrf.mxu1 }
 0x65c   : > { %v1188_v5 = vpack.c.bf16 %v1181_v4, %v1135_v62 }
 0x65d   : > { %v2591_v6 = vpop.f32.mrf.mxu0  ;;  %v2596_v7 = vpop.f32.mrf.mxu1 }
 0x65e   : > { %1194 = vxpose.xlu0.c.b16.end [2/2] (short) (narrow) %v1188_v5, 16 }
 0x65f   : > { %v1184_v44 = vpop.f32.mrf.mxu1 }
 0x661   : > { %v2597_v9 = vpop.f32.mrf.mxu1 }
 0x662   : > { %1439 = vxpose.xlu0.c.b16.start.end [1/1] (short) (narrow) %v1369_v8, 16 }
 0x666   : > { %1501 = vxpose.xlu0.c.b16.start.end [1/1] (short) (narrow) %v1370_v10, 16 }
 0x66d   : > { %v1433_v11 = vpop.f32.mrf.mxu1 }
 0x66e   : > { %v1434_v12 = vadd.f32 %v1433_v11, %v3063_v13 }
 0x66f   : > { %v2610_v14 = vpop.f32.mrf.mxu1 }
 0x670   : > { %v1625_v15 = vsel %vm717_vm4, %v1434_v12, -inf }
 0x671   : > { %v1436_v16 = vpop.f32.mrf.mxu1 }
 0x673   : > { %1626 = vmax.xlane.f32.xlu0 %v1625_v15  ;;  %v2611_v18 = vpop.f32.mrf.mxu1 }
 0x6bc   : > { %v1201_v20 = vpop.trf.xlu0 }
 0x6bd   : > { %2603 = vmatmul.mubr.msk.bf16.vlgmr.msra.gmra.mxu0 %vm482_vm1, %v1201_v20 }
 0x6be   : > { %2613 = vmatpush3.bf16.msra.mxu0 %v1459_v21  ;;  %2614 = vmatprep.mubr.msk.bf16.mxu0 %vm2873_vm2, %v2872_v17 }
 0x6bf   : > { %2624 = vmatprep.subr.bf16.mxu0 %v2872_v17 }
 0x6c4   : > { %v1447_v23 = vpop.trf.xlu0 }
 0x6c5   : > { %2615 = vmatmul.mubr.msk.bf16.vlgmr.msra.gmra.mxu0 %vm717_vm4, %v1447_v23 }
 0x6c6   : > { %2625 = vmatpush3.bf16.msra.mxu0 %v1583_v24  ;;  %2626 = vmatprep.mubr.msk.bf16.mxu0 %vm2873_vm2, %v2872_v17 }
 0x6c7   : > { %2636 = vmatprep.subr.bf16.mxu0 %v2872_v17 }
 0x6c8   : > { %v1509_v25 = vpop.trf.xlu0 }
 0x6c9   : > { %2621 = vmatmul.mubr.msk.bf16.vlgmr.msra.gmra.mxu1 %vm717_vm4, %v1509_v25 }
 0x6ca   : > { %2632 = vmatprep.mubr.msk.bf16.mxu1 %vm2873_vm2, %v2872_v17 }
 0x6cd   : > { %2627 = vmatmul.mubr.msk.bf16.vlgmr.msra.gmra.mxu0 %vm717_vm4, %v1571_v27 }
 0x6ce   : > { %2638 = vmatprep.mubr.msk.bf16.mxu0 %vm2873_vm2, %v2872_v17 }
 0x6fc   : > { %v1627_v29 = vpop.xlane.xlu0 %1626 }
 0x6fd   : > { %v1637_v30 = vsub.f32 %v1434_v12, %v1627_v29 }
 0x6ff   : > { %v1641_v31 = vmul.f32 1.442695, %v1637_v30 }
 0x701   : > { %2773 = vpow2.f32 %v1641_v31 }
 0x70e   : > { %v2774_v47 = vpop.eup %2773 }
 0x70f   : > { %v1649_v54 = vsel %vm717_vm4, %v2774_v47, 0.0 }
 0x77d   : > { %v1258_v32 = vpop.f32.mrf.mxu0 }
 0x77e   : > { %1264 = vst.msk [vmem:[#allocation3] sm:$0xff] %vm482_vm1, %v1258_v32 }
 0x77f   : > { %v2604_v33 = vpop.f32.mrf.mxu0 }
 0x781   : > { %v1261_v34 = vpop.f32.mrf.mxu0 }
 0x783   : > { %v2605_v35 = vpop.f32.mrf.mxu0 }
 0x785   : > { %v1495_v36 = vpop.f32.mrf.mxu0 }
 0x786   : > { %v1496_v37 = vadd.f32 %v1495_v36, %v3063_v13 }
 0x787   : > { %v2616_v38 = vpop.f32.mrf.mxu0 }
 0x788   : > { %v1628_v39 = vsel %vm717_vm4, %v1496_v37, -inf }
 0x789   : > { %v1557_v40 = vpop.f32.mrf.mxu1  ;;  %1629 = vmax.xlane.f32.xlu1 %v1628_v39  ;;  %v1498_v41 = vpop.f32.mrf.mxu0 }
 0x78a   : > { %v1558_v42 = vadd.f32 %v1557_v40, %v3063_v13  ;;  %v2741_v41 = vld [vmem:[%s2973_s15 + $0x8] sm:$0xff]  }
 0x78b   : > { %v2617_v43 = vpop.f32.mrf.mxu0  ;;  %v2622_v45 = vpop.f32.mrf.mxu1 }
 0x78c   : > { %v1631_v46 = vsel %vm717_vm4, %v1558_v42, -inf }
 0x78d   : > { %1632 = vmax.xlane.f32.xlu0 %v1631_v46  ;;  %v1560_v49 = vpop.f32.mrf.mxu1  ;;  %v1619_v50 = vpop.f32.mrf.mxu0 }
 0x78e   : > { %v1620_v51 = vadd.f32 %v1619_v50, %v3063_v13 }
 0x78f   : > { %v2623_v52 = vpop.f32.mrf.mxu1  ;;  %v2628_v53 = vpop.f32.mrf.mxu0 }
 0x790   : > { %v1634_v55 = vsel %vm717_vm4, %v1620_v51, -inf }
 0x791   : > { %1650 = vadd.xlane.f32.xlu0 %v1649_v54  ;;  %1635 = vmax.xlane.f32.xlu1 %v1634_v55  ;;  %v1622_v56 = vpop.f32.mrf.mxu0 }
 0x793   : > { %v2629_v57 = vpop.f32.mrf.mxu0 }
 0x7a7   : > { %1333 = vrot.lane.b32.xlu0 %v3038_v48, %s2875_s28 }
 0x812   : > { %v1630_v58 = vpop.xlane.xlu1 %1629 }
 0x813   : > { %v1638_v59 = vsub.f32 %v1496_v37, %v1630_v58 }
 0x815   : > { %v1643_v60 = vmul.f32 1.442695, %v1638_v59 }
 0x816   : > { %v1633_v61 = vpop.xlane.xlu0 %1632 }
 0x817   : > { %2775 = vpow2.f32 %v1643_v60  ;;  %v1639_v62 = vsub.f32 %v1558_v42, %v1633_v61  ;;  %v2742_v42 = vld [vmem:[%s2973_s15] sm:$0xff]   ;;  %v1945_v61 = vsub.s32 2, %v3019_v26  ;;  %s2471_s15 = sld [smem:[#allocation6 + $0x1]] (!%p2470_p11) }
 0x819   : > { %v1645_v13 = vmul.f32 1.442695, %v1639_v62 }
 0x81a   : > { %v1651_v63 = vpop.xlane.xlu0 %1650  ;;  %v1636_v0 = vpop.xlane.xlu1 %1635 }
 0x81b   : > { %2777 = vpow2.f32 %v1645_v13  ;;  %v1640_v1 = vsub.f32 %v1620_v51, %v1636_v0  ;;  %v1939_v13 = vld [vmem:[#allocation3] sm:$0xff] }
 0x81c   : > { %2779 = vrcp.f32 %v1651_v63  ;;  %v1941_v0 = vadd.f32 %v1939_v13, %v2997_v2 }
 0x81d   : > { %v1647_v4 = vmul.f32 1.442695, %v1640_v1  ;;  %v1946_v1 = vrot.slane %v3023_v28, %v1945_v61 }
 0x81e   : > { %v1334_v14 = vpop.permute.xlu0 %1333 }
 0x81f   : > { %2781 = vpow2.f32 %v1647_v4  ;;  %v3171_v4 = vadd.f32 %v1946_v1, %v1941_v0 }
 0x824   : > { %v2776_v5 = vpop.eup %2775 }
 0x825   : > { %v1652_v6 = vsel %vm717_vm4, %v2776_v5, 0.0 }
 0x826   : > { %1653 = vadd.xlane.f32.xlu1 %v1652_v6 }
 0x828   : > { %v2778_v7 = vpop.eup %2777 }
 0x829   : > { %v2780_v48 = vpop.eup %2779  ;;  %v1655_v8 = vsel %vm717_vm4, %v2778_v7, 0.0 }
 0x82a   : > { %1656 = vadd.xlane.f32.xlu1 %v1655_v8  ;;  %v1665_v44 = vmul.f32 %v2780_v48, %v2774_v47 }
 0x82c   : > { %v2782_v9 = vpop.eup %2781  ;;  %v1673_v10 = vpack.c.bf16 %v1665_v44, %v1665_v44 }
 0x82d   : > { %v1658_v11 = vsel %vm717_vm4, %v2782_v9, 0.0 }
 0x82e   : > { %v1681_v12 = vsel %vm717_vm4, %v1673_v10, 0  ;;  %1659 = vadd.xlane.f32.xlu1 %v1658_v11 }
 0x82f   : > { %2631 = vmatpush3.bf16.xpose.msra.mxu1 %v1681_v12 }
 0x830   : > { %2642 = vmatprep.subr.bf16.mxu1 %v2872_v17 }
 0x861   : > { %1336 = vxpose.xlu1.b32.start.end [1/1] (short) (narrow) %v1334_v14, 32 }
 0x8af   : > { %v1654_v15 = vpop.xlane.xlu1 %1653 }
 0x8b0   : > { %2783 = vrcp.f32 %v1654_v15 }
 0x8b3   : > { %v1657_v21 = vpop.xlane.xlu1 %1656 }
 0x8b4   : > { %2785 = vrcp.f32 %v1657_v21 }
 0x8b7   : > { %v1660_v22 = vpop.xlane.xlu1 %1659 }
 0x8b8   : > { %2787 = vrcp.f32 %v1660_v22 }
 0x8bd   : > { %v2784_v16 = vpop.eup %2783 }
 0x8be   : > { %v1666_v18 = vmul.f32 %v2784_v16, %v2776_v5  ;;  %v1949_v5 = vsel %vm482_vm1, %v3171_v4, 0.0 }
 0x8c0   : > { %v1674_v19 = vpack.c.bf16 %v1666_v18, %v1666_v18 }
 0x8c1   : > { %v2786_v23 = vpop.eup %2785 }
 0x8c2   : > { %v1727_v20 = vsel %vm717_vm4, %v1674_v19, 0  ;;  %v1667_v24 = vmul.f32 %v2786_v23, %v2778_v7 }
 0x8c3   : > { %2637 = vmatpush3.bf16.xpose.msra.mxu0 %v1727_v20 }
 0x8c4   : > { %2648 = vmatprep.subr.bf16.mxu0 %v2872_v17  ;;  %v1675_v27 = vpack.c.bf16 %v1667_v24, %v1667_v24  ;;  %v2743_v24 = vld [vmem:[%s2978_s18 + $0x8] sm:$0xff]  }
 0x8c5   : > { %v2788_v25 = vpop.eup %2787 }
 0x8c6   : > { %v1668_v29 = vmul.f32 %v2788_v25, %v2782_v9  ;;  %v1773_v32 = vsel %vm717_vm4, %v1675_v27, 0  ;;  %v2744_v25 = vld [vmem:[%s2978_s18] sm:$0xff]   ;;  %s2354_s18 = scalar_lea.vmem (!%p2470_p11), [#allocation2], %s2471_s15 }
 0x8c8   : > { %v1676_v33 = vpack.c.bf16 %v1668_v29, %v1668_v29 }
 0x8ca   : > { %v1819_v36 = vsel %vm717_vm4, %v1676_v33, 0  ;;  %v1977_v33 = vsub.s32 3, %v3019_v26 }
 0x8dd   : > { %v1352_v30 = vpop.trf.xlu1 }
 0x8de   : > { %v1669_v31 = vpack.c.bf16 %v1352_v30, %v1352_v30 }
 0x8e0   : > { %2633 = vmatmul.mubr.msk.bf16.vlgmr.msra.gmra.mxu1 %vm717_vm4, %v1669_v31 }
 0x8e1   : > { %2643 = vmatpush3.bf16.xpose.msra.mxu1 %v1773_v32  ;;  %v1353_v34 = vpop.trf.xlu1  ;;  %2644 = vmatprep.mubr.msk.bf16.mxu1 %vm2873_vm2, %v2872_v17 }
 0x8e2   : > { %v1670_v35 = vpack.c.bf16 %v1353_v34, %v1353_v34  ;;  %2654 = vmatprep.subr.bf16.mxu1 %v2872_v17 }
 0x8e4   : > { %2639 = vmatmul.mubr.msk.bf16.vlgmr.msra.gmra.mxu0 %vm717_vm4, %v1670_v35 }
 0x8e5   : > { %2649 = vmatpush3.bf16.xpose.msra.mxu0 %v1819_v36  ;;  %v1354_v37 = vpop.trf.xlu1  ;;  %2650 = vmatprep.mubr.msk.bf16.mxu0 %vm2873_vm2, %v2872_v17  ;;  %v1978_v36 = vrot.slane %v3023_v28, %v1977_v33 }
 0x8e6   : > { %v1671_v38 = vpack.c.bf16 %v1354_v37, %v1354_v37  ;;  %2662 = vmatprep.subr.bf16.mxu0 %v2872_v17  ;;  %v1983_v37 = vsub.s32 4, %v3019_v26 }
 0x8e8   : > { %2645 = vmatmul.mubr.msk.bf16.vlgmr.msra.gmra.mxu1 %vm717_vm4, %v1671_v38 }
 0x8e9   : > { %v1355_v39 = vpop.trf.xlu1  ;;  %2658 = vmatprep.mubr.msk.bf16.mxu1 %vm2873_vm2, %v2872_v17  ;;  %2655 = vmatpush3.bf16.msra.mxu1 %v2741_v41  ;;  %v1984_v41 = vrot.slane %v3023_v28, %v1983_v37 }
 0x8ea   : > { %v1672_v40 = vpack.c.bf16 %v1355_v39, %v1355_v39  ;;  %2656 = vmatprep.subr.bf16.mxu1 %v2872_v17 }
 0x8ec   : > { %2651 = vmatmul.mubr.msk.bf16.vlgmr.msra.gmra.mxu0 %vm717_vm4, %v1672_v40 }
 0x8ed   : > { %2666 = vmatprep.mubr.msk.bf16.mxu0 %vm2873_vm2, %v2872_v17  ;;  %2657 = vmatpush3.bf16.msra.mxu1 %v2742_v42 }
 0x8ee   : > { %2670 = vmatprep.subr.bf16.mxu1 %v2872_v17  ;;  %2663 = vmatpush3.bf16.msra.mxu0 %v2743_v24 }
 0x8ef   : > { %2664 = vmatprep.subr.bf16.mxu0 %v2872_v17 }
 0x8f2   : > { %2665 = vmatpush3.bf16.msra.mxu0 %v2744_v25 }
 0x9a0   : > { %v1717_v43 = vpop.f32.mrf.mxu1 }
 0x9a2   : > { %v2634_v45 = vpop.f32.mrf.mxu1 }
 0x9a4   : > { %v1720_v46 = vpop.f32.mrf.mxu1  ;;  %v1763_v47 = vpop.f32.mrf.mxu0 }
 0x9a5   : > { %v1861_v49 = vpack.c.bf16 %v1763_v47, %v1717_v43  ;;  %v2745_v47 = vld [vmem:[%s2983_s21 + $0x38] sm:$0xff]  }
 0x9a6   : > { %v2635_v50 = vpop.f32.mrf.mxu1  ;;  %v2640_v51 = vpop.f32.mrf.mxu0 }
 0x9a7   : > { %1867 = vxpose.xlu0.c.b16.start [1/2] (short) (narrow) %v1861_v49, 16  ;;  %v2746_v49 = vld [vmem:[%s2983_s21 + $0x30] sm:$0xff]   ;;  %v2747_v50 = vld [vmem:[%s2983_s21 + $0x28] sm:$0xff]   ;;  %v2748_v51 = vld [vmem:[%s2983_s21 + $0x20] sm:$0xff]  }
 0x9a8   : > { %v1809_v52 = vpop.f32.mrf.mxu1  ;;  %v1766_v53 = vpop.f32.mrf.mxu0 }
 0x9a9   : > { %v2750_v53 = vld [vmem:[%s2983_s21 + $0x10] sm:$0xff]  }
 0x9aa   : > { %v2641_v54 = vpop.f32.mrf.mxu0  ;;  %v2646_v55 = vpop.f32.mrf.mxu1 }
 0x9ab   : > { %v2751_v54 = vld [vmem:[%s2983_s21 + $0x8] sm:$0xff]   ;;  %v2752_v55 = vld [vmem:[%s2983_s21] sm:$0xff]  }
 0x9ac   : > { %v1812_v56 = vpop.f32.mrf.mxu1  ;;  %v1855_v57 = vpop.f32.mrf.mxu0 }
 0x9ad   : > { %v1862_v58 = vpack.c.bf16 %v1855_v57, %v1809_v52  ;;  %v2749_v52 = vld [vmem:[%s2983_s21 + $0x18] sm:$0xff]   ;;  %v1994_v56 = vsub.s32 6, %v3019_v26 }
 0x9ae   : > { %v2647_v59 = vpop.f32.mrf.mxu1  ;;  %v2652_v60 = vpop.f32.mrf.mxu0 }
 0x9af   : > { %1868 = vxpose.xlu0.c.b16.end [2/2] (short) (narrow) %v1862_v58, 16  ;;  %v1995_v57 = vrot.slane %v3023_v28, %v1994_v56 }
 0x9b0   : > { %v1858_v62 = vpop.f32.mrf.mxu0 }
 0x9b2   : > { %v2653_v63 = vpop.f32.mrf.mxu0 }
 0x9bc   : > { %1950 = vadd.xlane.f32.xlu0 %v1949_v5 }
 0xa0d   : > { %v1875_v6 = vpop.trf.xlu0 }
 0xa0e   : > { %2659 = vmatmul.mubr.msk.bf16.vlgmr.msra.gmra.mxu1 %vm482_vm1, %v1875_v6 }
 0xa0f   : > { %2686 = vmatprep.mubr.msk.bf16.mxu1 %vm2873_vm2, %v2872_v17  ;;  %2671 = vmatpush3.bf16.msra.mxu1 %v2745_v47 }
 0xa10   : > { %2672 = vmatprep.subr.bf16.mxu1 %v2872_v17 }
 0xa13   : > { %2673 = vmatpush3.bf16.msra.mxu1 %v2746_v49 }
 0xa14   : > { %2674 = vmatprep.subr.bf16.mxu1 %v2872_v17 }
 0xa17   : > { %2675 = vmatpush3.bf16.msra.mxu1 %v2747_v50 }
 0xa18   : > { %2676 = vmatprep.subr.bf16.mxu1 %v2872_v17 }
 0xa1b   : > { %2677 = vmatpush3.bf16.msra.mxu1 %v2748_v51 }
 0xa1c   : > { %2678 = vmatprep.subr.bf16.mxu1 %v2872_v17 }
 0xa1f   : > { %2679 = vmatpush3.bf16.msra.mxu1 %v2749_v52 }
 0xa20   : > { %2680 = vmatprep.subr.bf16.mxu1 %v2872_v17 }
 0xa23   : > { %2681 = vmatpush3.bf16.msra.mxu1 %v2750_v53 }
 0xa24   : > { %2682 = vmatprep.subr.bf16.mxu1 %v2872_v17 }
 0xa27   : > { %2683 = vmatpush3.bf16.msra.mxu1 %v2751_v54 }
 0xa28   : > { %2684 = vmatprep.subr.bf16.mxu1 %v2872_v17 }
 0xa2b   : > { %2685 = vmatpush3.bf16.msra.mxu1 %v2752_v55 }
 0xa45   : > { %v1951_v7 = vpop.xlane.xlu0 %1950 }
 0xa46   : > { %v1955_v48 = vmul.f32 0.03125, %v1951_v7 }
 0xa48   : > { %v1957_v8 = vsub.f32 %v3171_v4, %v1955_v48 }
 0xa4a   : > { %v1959_v44 = vmul.f32 %v1957_v8, %v1957_v8 }
 0xa4c   : > { %v1961_v2 = vsel %vm482_vm1, %v1959_v44, 0.0 }
 0xa4d   : > { %1962 = vadd.xlane.f32.xlu0 %v1961_v2 }
 0xace   : > { %v1932_v9 = vpop.f32.mrf.mxu1 }
 0xacf   : > { %1938 = vst.msk [vmem:[#allocation3 + $0x8] sm:$0xff] %vm482_vm1, %v1932_v9 }
 0xad0   : > { %v2660_v10 = vpop.f32.mrf.mxu1 }
 0xad2   : > { %v1935_v11 = vpop.f32.mrf.mxu1 }
 0xad3   : > { %v2178_v11 = vsub.s32 5, %v3019_v26 }
 0xad4   : > { %v2661_v12 = vpop.f32.mrf.mxu1 }
 0xad5   : > { %v2179_v12 = vrot.slane %v3023_v28, %v2178_v11 }
 0xad6   : > { %v1940_v14 = vld [vmem:[#allocation3 + $0x8] sm:$0xff] }
 0xad7   : > { %v1942_v15 = vadd.f32 %v1940_v14, %v2999_v3  ;;  %v1963_v3 = vpop.xlane.xlu0 %1962 }
 0xad8   : > { %v1967_v27 = vmul.f32 0.03125, %v1963_v3 }
 0xad9   : > { %v3182_v16 = vadd.f32 %v1946_v1, %v1942_v15 }
 0xada   : > { %v1969_v29 = vadd.f32 1e-05, %v1967_v27 }
 0xadb   : > { %v1952_v18 = vsel %vm482_vm1, %v3182_v16, 0.0 }
 0xadc   : > { %1953 = vadd.xlane.f32.xlu1 %v1952_v18  ;;  %2789 = vrsqrt.f32 %v1969_v29 }
 0xae9   : > { %v2790_v34 = vpop.eup %2789 }
 0xaea   : > { %v1973_v35 = vmul.f32 %v2790_v34, %v1957_v8 }
 0xaec   : > { %v1979_v40 = vmul.f32 %v1978_v36, %v1973_v35 }
 0xaee   : > { %v1985_v43 = vadd.f32 %v1984_v41, %v1979_v40 }
 0xb65   : > { %v1954_v19 = vpop.xlane.xlu1 %1953 }
 0xb66   : > { %v1956_v20 = vmul.f32 0.03125, %v1954_v19 }
 0xb68   : > { %v1958_v21 = vsub.f32 %v3182_v16, %v1956_v20 }
 0xb6a   : > { %v1960_v22 = vmul.f32 %v1958_v21, %v1958_v21 }
 0xb6c   : > { %v1964_v23 = vsel %vm482_vm1, %v1960_v22, 0.0 }
 0xb6d   : > { %1965 = vadd.xlane.f32.xlu0 %v1964_v23 }
 0xbf6   : > { %v1966_v30 = vpop.xlane.xlu0 %1965 }
 0xbf7   : > { %v1968_v31 = vmul.f32 0.03125, %v1966_v30 }
 0xbf9   : > { %v1970_v32 = vadd.f32 1e-05, %v1968_v31 }
 0xbfb   : > { %2791 = vrsqrt.f32 %v1970_v32 }
 0xc08   : > { %v2792_v38 = vpop.eup %2791 }
 0xc09   : > { %v1974_v39 = vmul.f32 %v2792_v38, %v1958_v21 }
 0xc0b   : > { %v1980_v42 = vmul.f32 %v1978_v36, %v1974_v39 }
 0xc0d   : > { %v1986_v45 = vadd.f32 %v1984_v41, %v1980_v42 }
 0xc0f   : > { %v1987_v46 = vpack.c.bf16 %v1986_v45, %v1985_v43 }
 0xc11   : > { %2667 = vmatmul.mubr.msk.bf16.vlgmr.msra.gmra.mxu0 %vm482_vm1, %v1987_v46 }
 0xcd1   : > { %v2045_v58 = vpop.f32.mrf.mxu0 }
 0xcd2   : > { %v2046_v59 = vadd.f32 %v2045_v58, %v1995_v57 }
 0xcd3   : > { %v2668_v60 = vpop.f32.mrf.mxu0 }
 0xcd4   : > { %v2460_v61 = vmul.f32 -1.702, %v2046_v59 }
 0xcd5   : > { %v2048_v62 = vpop.f32.mrf.mxu0 }
 0xcd6   : > { %v2056_v13 = vmul.f32 1.442695, %v2460_v61  ;;  %v2049_v63 = vadd.f32 %v2048_v62, %v1995_v57 }
 0xcd7   : > { %v2669_v0 = vpop.f32.mrf.mxu0 }
 0xcd8   : > { %2793 = vpow2.f32 %v2056_v13  ;;  %v2461_v1 = vmul.f32 -1.702, %v2049_v63 }
 0xcda   : > { %v2058_v5 = vmul.f32 1.442695, %v2461_v1 }
 0xcdc   : > { %2795 = vpow2.f32 %v2058_v5 }
 0xce5   : > { %v2794_v6 = vpop.eup %2793 }
 0xce6   : > { %v2060_v17 = vadd.f32 1.0, %v2794_v6 }
 0xce8   : > { %2797 = vrcp.f32 %v2060_v17 }
 0xce9   : > { %v2796_v7 = vpop.eup %2795 }
 0xcea   : > { %v2061_v48 = vadd.f32 1.0, %v2796_v7 }
 0xcec   : > { %2799 = vrcp.f32 %v2061_v48 }
 0xcf5   : > { %v2798_v8 = vpop.eup %2797 }
 0xcf6   : > { %v2066_v2 = vmul.f32 %v2798_v8, %v2046_v59 }
 0xcf9   : > { %v2800_v44 = vpop.eup %2799 }
 0xcfa   : > { %v2067_v9 = vmul.f32 %v2800_v44, %v2049_v63 }
 0xcfc   : > { %v2068_v10 = vpack.c.bf16 %v2067_v9, %v2066_v2 }
 0xcfe   : > { %2687 = vmatmul.mubr.bf16.vlgmr.msra.gmra.mxu1 %v2068_v10 }
 0xdbe   : > { %v2167_v14 = vpop.f32.mrf.mxu1 }
 0xdbf   : > { %v2174_v15 = vadd.f32 %v2167_v14, %v3171_v4 }
 0xdc0   : > { %v2688_v18 = vpop.f32.mrf.mxu1 }
 0xdc1   : > { %v2180_v19 = vadd.f32 %v2179_v12, %v2174_v15 }
 0xdc2   : > { %v2170_v20 = vpop.f32.mrf.mxu1 }
 0xdc3   : > { %2182 = vst.msk [vmem:[#allocation2] sm:$0xff] %vm482_vm1, %v2180_v19  ;;  %v2175_v21 = vadd.f32 %v2170_v20, %v3182_v16  ;;  %2187 = sbr.rel (%p2470_p11) target bundleno = 4052 (0xfd4), region = 68 }
 0xdc4   : > { %v2689_v22 = vpop.f32.mrf.mxu1 }
 0xdc5   : > { %v2181_v23 = vadd.f32 %v2179_v12, %v2175_v21 }
 0xdc7   : > { %2183 = vst.msk [vmem:[#allocation2 + $0x8] sm:$0xff] %vm482_vm1, %v2181_v23 }
 0xdc8   : > { %vm2192_vm5 = vcmask 253952   ;;  %vm2203_vm6 = vcmask 254976   ;;  %v2801_v30 = vld [vmem:[%s3272_s10 + $0x8] sm:$0xff]   ;;  %v2876_v31 = vmov 0.0   ;;  %vm2877_vm7 = vmmov 0   ;;  %v2802_v32 = vld [vmem:[%s3272_s10] sm:$0xff]  }
 0xdc9   : > { %2690 = vmatprep.subr.bf16.mxu0 %v2876_v31  ;;  %2694 = vmatprep.mubr.msk.bf16.mxu0 %vm2877_vm7, %v2876_v31  ;;  %v2473_v37 = vld [vmem:[%s3270_s8] ss:$0 sm:$0xff] }
 0xdca   : > { %2691 = vmatpush3.bf16.msra.mxu0 %v2801_v30  ;;  %v2474_v39 = vld [vmem:[%s3271_s9] ss:$0 sm:$0xff] }
 0xdcb   : > { %2692 = vmatprep.subr.bf16.mxu0 %v2876_v31 }
 0xdce   : > { %v2191_v26 = vld [vmem:[%s2190_s17] sm:$0x1]  ;;  %v2472_v28 = vld [vmem:[%s2354_s18 + $0x8] sm:$0x1]  ;;  %2693 = vmatpush3.bf16.msra.mxu0 %v2802_v32 }
 0xdcf   : > { %2193 = vst.msk [vmem:[#allocation4] sm:$0x1] %vm2192_vm5, %v2191_v26  ;;  %2199 = vst.msk [vmem:[#allocation4 + $0x1] sm:$0x1] %vm2192_vm5, %v2472_v28 }
 0xdd6   : > { %v2200_v4 = vld [vmem:[#allocation4] sm:$0x3] }
 0xdd7   : > { %v2204_v16 = vsel %vm2203_vm6, %v2200_v4, 0.0 }
 0xdd8   : > { %2205 = vadd.xlane.f32.xlu0 %v2204_v16 }
 0xe61   : > { %v2206_v24 = vpop.xlane.xlu0 %2205 }
 0xe62   : > { %v2207_v25 = vmul.f32 0.03125, %v2206_v24 }
 0xe64   : > { %v2208_v3 = vsub.f32 %v2200_v4, %v2207_v25 }
 0xe66   : > { %v2209_v27 = vmul.f32 %v2208_v3, %v2208_v3 }
 0xe68   : > { %v2210_v29 = vsel %vm2203_vm6, %v2209_v27, 0.0 }
 0xe69   : > { %2211 = vadd.xlane.f32.xlu0 %v2210_v29 }
 0xef2   : > { %v2212_v33 = vpop.xlane.xlu0 %2211 }
 0xef3   : > { %v2213_v34 = vmul.f32 0.03125, %v2212_v33 }
 0xef5   : > { %v2214_v35 = vadd.f32 1e-05, %v2213_v34 }
 0xef7   : > { %2803 = vrsqrt.f32 %v2214_v35 }
 0xf04   : > { %v2804_v36 = vpop.eup %2803 }
 0xf05   : > { %v2216_v38 = vmul.f32 %v2804_v36, %v2208_v3 }
 0xf07   : > { %v2223_v40 = vmul.f32 %v2473_v37, %v2216_v38 }
 0xf09   : > { %v2230_v41 = vadd.f32 %v2474_v39, %v2223_v40 }
 0xf0b   : > { %v2231_v42 = vpack.c.bf16 %v2230_v41, %v2230_v41 }
 0xf0d   : > { %2695 = vmatmul.mubr.msk.bf16.vlgmr.msra.gmra.mxu0 %vm482_vm1, %v2231_v42 }
 0xfcd   : > { %v2285_v43 = vpop.f32.mrf.mxu0 }
 0xfce   : > { %2291 = vst.msk [vmem:[#allocation7] sm:$0x3] %vm2203_vm6, %v2285_v43 }
 0xfcf   : > { %v2696_v45 = vpop.f32.mrf.mxu0 }
 0xfd1   : > { %v2288_v46 = vpop.f32.mrf.mxu0 }
 0xfd3   : > { %v2697_v47 = vpop.f32.mrf.mxu0 }
 0xfd4 PF: > { %s3275_s27 = sadd.s32 4294967295, %s2869_s24   ;;  %s2878_s0 = smov [#allocation7]  }
 0xfd5   : > { %p3238_p12 = scmp.eq.s32.totalorder %s3275_s27, 1  ;;  %s2301_s25 = sshll.u32 %s2878_s0, 4  ;;  %s2302_s25 = int_to_ptr.vmem [resolvable:$true] %s2301_s25 }
 0xfd6   : > { %s2817_s26 = scalar_lea.vmem %s2302_s25, 32  ;;  %p2824_p2 = scmp.lt.s32.totalorder %s2302_s25, %s2302_s25 }
 0xfd7   : > { %p2818_p13 = scmp.ne.s32.totalorder %s2302_s25, %s2817_s26  ;;  %p2825_p3 = scmp.lt.s32.totalorder %s2817_s26, %s2817_s26 }
 0xfd9   : > { %p2819_p0 = pnand %p2818_p13, %p3238_p12  ;;  %p2826_p4 = por %p2825_p3, %p2824_p2 }
 0xfdb   : > { %p2820_p1 = pneg %p2819_p0 }
 0xfdd   : > { %p2827_p5 = pnand %p2826_p4, %p2820_p1 }
 0xfdf   : > { %2830 = shalt.err (!%p2827_p5)
}
 0xfe0   : > { %2699 = dma.vmem_to_hbm [thread:$0]  (%p3238_p12), %s2302_s25, 32, %s3273_s11, [#allocation8]  }
 0xfe1   : > { %2856 = dma.done.wait (%p3238_p12), [#allocation8], 32  }
 0xfe2   : > { %2858 = vsyncadd (%p3238_p12), [#allocation8], 4294967264 }
 0xfe3 PF: > { %s28_s24 = sadd.s32 1, %s2869_s24   ;;  %s3277_s15 = sld [smem:[#allocation11_spill]] }
 0xfe4   : > { %p25_p6 = scmp.ge.s32.totalorder %s28_s24, 4   ;;  %s3278_s22 = smov %s2865_s23 }
 0xfe6   :  { %27 = sbr.rel (!%p25_p6) target bundleno = 17 (0x11), region = 113 }
 0xfe9   : > { %s3279_s23 = smov %s3277_s15 }
 0xfeb   :  { %2314 = vsyncpa [#allocation8], 1 }
 0xfec   :  { %2316 = vsyncpa [#allocation8 + $0x1], 1 }

</bundles_post_ra>
